<compile_context>
chip_gen: v7x
topology: tpu7x:2x2x1
jax: 0.10.0
libtpu: 0.0.40
codegen_flags: <defaults>
</compile_context>

<pallas_src>
import functools

import jax
import jax.numpy as jnp
import numpy as np
from jax import lax
from jax.experimental import pallas as pl
from jax.experimental.pallas import tpu as pltpu

EPS = 1e-5  # nn.InstanceNorm2d default eps


# ---------------------------------------------------------------------------
# Pallas kernel for one AAD (`ADD`) layer.
# grid = (sample, phase, spatial tile).  phase 0: stats (+ optional VMEM
# cache of h); phase 1: normalize + blend + store.
# ---------------------------------------------------------------------------
def _add_kernel(hw, c_x, tile_rows, use_cache,
                h_ref, zatt_ref, idbg_ref,
                w_att_ref, b_att_ref, w_h_ref, b_h_ref,
                out_ref, sum_ref, ssq_ref, hcache_ref):
    phase = pl.program_id(1)
    t = pl.program_id(2)

    # ---- phase 0: single-pass InstanceNorm statistics ---------------------
    # NOTE: var = E[x^2] - E[x]^2 in f32; fine at these magnitudes.  A shifted
    # / Welford formulation would slot into the same phase-0 structure if the
    # activation statistics ever get extreme.
    @pl.when((phase == 0) & (t == 0))
    def _():
        sum_ref[...] = jnp.zeros_like(sum_ref)
        ssq_ref[...] = jnp.zeros_like(ssq_ref)

    @pl.when(phase == 0)
    def _():
        h = h_ref[0].astype(jnp.float32)                      # (T, c_x)
        sum_ref[...] += jnp.sum(h, axis=0, keepdims=True)
        ssq_ref[...] += jnp.sum(h * h, axis=0, keepdims=True)
        if use_cache:
            row = pl.multiple_of(t * tile_rows, tile_rows)
            hcache_ref[pl.ds(row, tile_rows), :] = h

    # ---- phase 1: normalize + AAD blend, one spatial tile -----------------
    @pl.when(phase == 1)
    def _():
        inv_hw = 1.0 / float(hw)
        mean = sum_ref[...] * inv_hw                          # (1, c_x)
        var = ssq_ref[...] * inv_hw - mean * mean             # biased variance
        rstd = lax.rsqrt(var + EPS)

        if use_cache:
            row = pl.multiple_of(t * tile_rows, tile_rows)
            h = hcache_ref[pl.ds(row, tile_rows), :]          # f32, from VMEM
        else:
            h = h_ref[0].astype(jnp.float32)                  # re-read from HBM
        h_norm = (h - mean) * rstd                            # (T, c_x)

        # Fused att_beta|att_gamma: single (T, c_att) @ (c_att, 2*c_x) matmul.
        bg = jnp.dot(zatt_ref[0], w_att_ref[...],
                     preferred_element_type=jnp.float32) + b_att_ref[...]
        att_beta = bg[:, :c_x]
        att_gamma = bg[:, c_x:]

        # Mask M = sigmoid(h_conv(h_norm)); 1-channel output -> lane reduce
        # (XLU) + EUP sigmoid, both off the VPU critical path.
        m = jax.nn.sigmoid(
            jnp.sum(h_norm * w_h_ref[...], axis=-1, keepdims=True)
            + b_h_ref[...])                                   # (T, 1)

        idbg = idbg_ref[0].astype(jnp.float32)                # (2, c_x)
        id_beta = idbg[0:1, :]
        id_gamma = idbg[1:2, :]

        a = att_gamma * h_norm + att_beta
        i = id_gamma * h_norm + id_beta
        out_ref[0] = (a + m * (i - a)).astype(out_ref.dtype)


# ---------------------------------------------------------------------------
# Tiling helpers.
# ---------------------------------------------------------------------------
def _round_up(x, m):
    return ((x + m - 1) // m) * m


def _pick_tiling(hw, target, row_align):
    """Return (tile_rows, padded_hw).  tile_rows is a multiple of row_align;
    padded_hw is a multiple of tile_rows (zero padding handled by caller)."""
    target = max(row_align, (target // row_align) * row_align)
    if hw <= target:
        t = _round_up(hw, row_align)
        return t, t
    # Prefer a divisor of hw (no padding needed).
    for t in range(target, row_align - 1, -row_align):
        if hw % t == 0:
            return t, hw
    # Awkward factorization: keep the target tile and zero-pad hw.
    return target, _round_up(hw, target)


def add_forward(h, z_att, z_id, params, *, tile_rows=2048, io_dtype=None,
                cache_h=None, vmem_budget_bytes=48 << 20):
    """AAD forward.  Channels-last activations:
    h (N,H,W,c_x), z_att (N,H,W,c_att), z_id (N,c_id) -> (N,H,W,c_x).

    io_dtype: dtype streamed through HBM for h / z_att / out (e.g. bf16 to
    halve memory traffic); compute stays f32 inside the kernel.
    cache_h: None = auto (cache whole sample's h in VMEM if it fits),
    True/False to force.
    """
    N, H, W, c_x = h.shape
    c_att = z_att.shape[-1]
    HW = H * W

    io_dtype = jnp.dtype(io_dtype) if io_dtype is not None else jnp.dtype(h.dtype)
    io_bytes = io_dtype.itemsize
    row_align = 8 if io_bytes >= 4 else (16 if io_bytes == 2 else 32)

    # Cap the tile so the double-buffered (h + z_att + out) working set stays
    # comfortably inside the VMEM budget (leave half for cache/constants).
    bytes_per_row = 2 * (2 * c_x + c_att) * io_bytes
    cap_rows = max(row_align, (vmem_budget_bytes // 2) // max(bytes_per_row, 1))
    T, HW_pad = _pick_tiling(HW, min(tile_rows, cap_rows), row_align)
    n_t = HW_pad // T

    # Decide whether the whole sample's (f32) h fits a VMEM cache, killing the
    # second HBM read of h in phase 1.
    pipe_bytes = 2 * T * (2 * c_x + c_att) * io_bytes
    cache_bytes = HW_pad * c_x * 4
    auto_cache = (n_t > 1 and
                  pipe_bytes + cache_bytes + (4 << 20) <= vmem_budget_bytes)
    use_cache = auto_cache if cache_h is None else bool(cache_h)

    # Free reshapes (contiguous dim merge); zero-pad HW only if needed
    # (zero rows do not perturb sum / sum-of-squares; padded rows are sliced
    # off the output).
    h2 = h.reshape(N, HW, c_x)
    zatt2 = z_att.reshape(N, HW, c_att)
    if HW_pad != HW:
        pad = HW_pad - HW
        h2 = jnp.pad(h2, ((0, 0), (0, pad), (0, 0)))
        zatt2 = jnp.pad(zatt2, ((0, 0), (0, pad), (0, 0)))
    h2 = h2.astype(io_dtype)
    zatt2 = zatt2.astype(io_dtype)

    # Hoisted per-sample z_id projections, packed beta|gamma -> one block.
    id_beta = z_id @ params["w_id1"].T + params["b_id1"]
    id_gamma = z_id @ params["w_id2"].T + params["b_id2"]
    id_bg = jnp.stack([id_beta, id_gamma], axis=1).astype(jnp.float32)  # (N,2,c_x)

    # Fused att weights: att_beta|att_gamma from one matmul (bf16 operands when
    # io_dtype is bf16; the dot keeps an f32 accumulator).
    w_att = jnp.concatenate([params["w_att1"].T, params["w_att2"].T],
                            axis=1).astype(io_dtype)                    # (c_att, 2c_x)
    b_att = jnp.concatenate([params["b_att1"], params["b_att2"]]
                            ).reshape(1, 2 * c_x).astype(jnp.float32)
    w_h = params["w_h"].reshape(1, c_x).astype(jnp.float32)
    b_h = params["b_h"].reshape(1, 1).astype(jnp.float32)

    kernel = functools.partial(_add_kernel, HW, c_x, T, use_cache)

    def _full(shape):
        return pl.BlockSpec(shape, lambda n, p, t: (0,) * len(shape))

    if use_cache:
        # Phase 1 reads h from the VMEM cache; pin the HBM block to tile 0.
        h_map = lambda n, p, t: (n, t * (1 - p), 0)
        cache_shape = (HW_pad, c_x)
    else:
        h_map = lambda n, p, t: (n, t, 0)
        cache_shape = (8, c_x)  # unused dummy scratch

    out = pl.pallas_call(
        kernel,
        out_shape=jax.ShapeDtypeStruct((N, HW_pad, c_x), io_dtype),
        grid_spec=pltpu.PrefetchScalarGridSpec(
            num_scalar_prefetch=0,
            grid=(N, 2, n_t),       # (sample, stats/apply phase, spatial tile)
            in_specs=[
                pl.BlockSpec((1, T, c_x), h_map),                       # h
                # z_att only needed in phase 1; phase 0 pins block 0.
                pl.BlockSpec((1, T, c_att), lambda n, p, t: (n, t * p, 0)),
                pl.BlockSpec((1, 2, c_x), lambda n, p, t: (n, 0, 0)),   # id beta|gamma
                _full((c_att, 2 * c_x)),
                _full((1, 2 * c_x)),
                _full((1, c_x)),
                _full((1, 1)),
            ],
            # Output written only in phase 1; phase 0 pins block 0 so the
            # unwritten buffer never gets flushed at the phase boundary.
            out_specs=pl.BlockSpec((1, T, c_x), lambda n, p, t: (n, t * p, 0)),
            scratch_shapes=[pltpu.VMEM((1, c_x), jnp.float32),   # sum
                            pltpu.VMEM((1, c_x), jnp.float32),   # sum of squares
                            pltpu.VMEM(cache_shape, jnp.float32)],  # h cache
        ),
        compiler_params=pltpu.CompilerParams(
            dimension_semantics=("parallel", "arbitrary", "arbitrary"),
            vmem_limit_bytes=int(vmem_budget_bytes)),
    )(h2, zatt2, id_bg, w_att, b_att, w_h, b_h)

    if HW_pad != HW:
        out = out[:, :HW, :]
    return out.reshape(N, H, W, c_x)


# ---------------------------------------------------------------------------
# ADDResBlk composition.
# ---------------------------------------------------------------------------
def relu_conv3x3(x, w_oihw):
    # TODO(synk): the 3x3 ReLU-convs are left to XLA (lax.conv_general_dilated);
    # only the AAD (`ADD`) blocks run as Pallas kernels.
    x = jax.nn.relu(x)
    w = jnp.transpose(w_oihw, (2, 3, 1, 0)).astype(x.dtype)    # OIHW -> HWIO
    return lax.conv_general_dilated(
        x, w, window_strides=(1, 1), padding="SAME",
        dimension_numbers=("NHWC", "HWIO", "NHWC"))


def add_res_blk_forward(h, z_att, z_id, params, *, tile_rows=2048,
                        io_dtype=None):
    x = add_forward(h, z_att, z_id, params["add1"],
                    tile_rows=tile_rows, io_dtype=io_dtype)
    x = relu_conv3x3(x, params["conv1_w"])
    # NB: the PyTorch forward() reuses add1 (not add2); mirrored exactly.
    x = add_forward(x, z_att, z_id, params["add1"],
                    tile_rows=tile_rows, io_dtype=io_dtype)
    x = relu_conv3x3(x, params["conv2_w"])
    if params["c_in"] != params["c_out"]:
        h = add_forward(h, z_att, z_id, params["add3"],
                        tile_rows=tile_rows, io_dtype=io_dtype)
        h = relu_conv3x3(h, params["conv3_w"])
    return x + h


# ---------------------------------------------------------------------------
# Parameter init (PyTorch-shaped weights) and pure-JAX references.
# ---------------------------------------------------------------------------
def init_add_params(key, c_x, c_att, c_id):
    ks = jax.random.split(key, 10)
    n = lambda k, s: jax.random.normal(k, s, jnp.float32) * 0.1
    return {
        "w_h":    n(ks[0], (1, c_x)),     "b_h":    n(ks[1], (1,)),
        "w_att1": n(ks[2], (c_x, c_att)), "b_att1": n(ks[3], (c_x,)),
        "w_att2": n(ks[4], (c_x, c_att)), "b_att2": n(ks[5], (c_x,)),
        "w_id1":  n(ks[6], (c_x, c_id)),  "b_id1":  n(ks[7], (c_x,)),
        "w_id2":  n(ks[8], (c_x, c_id)),  "b_id2":  n(ks[9], (c_x,)),
    }


def init_res_blk_params(key, c_in, c_out, c_att, c_id):
    ks = jax.random.split(key, 5)
    conv = lambda k, ci, co: (jax.random.normal(k, (co, ci, 3, 3), jnp.float32)
                              / np.sqrt(9.0 * ci))
    p = {
        "c_in": c_in, "c_out": c_out,
        "add1": init_add_params(ks[0], c_in, c_att, c_id),
        "conv1_w": conv(ks[1], c_in, c_in),
        "conv2_w": conv(ks[2], c_in, c_out),
    }
    if c_in != c_out:
        p["add3"] = init_add_params(ks[3], c_in, c_att, c_id)
        p["conv3_w"] = conv(ks[4], c_in, c_out)
    return p


def add_ref(h, z_att, z_id, p):
    """Channels-last pure-JAX reference matching the PyTorch ADD semantics."""
    mean = jnp.mean(h, axis=(1, 2), keepdims=True)
    var = jnp.mean((h - mean) ** 2, axis=(1, 2), keepdims=True)
    hn = (h - mean) / jnp.sqrt(var + EPS)
    att_beta = jnp.einsum("nhwc,oc->nhwo", z_att, p["w_att1"]) + p["b_att1"]
    att_gamma = jnp.einsum("nhwc,oc->nhwo", z_att, p["w_att2"]) + p["b_att2"]
    id_beta = (z_id @ p["w_id1"].T + p["b_id1"])[:, None, None, :]
    id_gamma = (z_id @ p["w_id2"].T + p["b_id2"])[:, None, None, :]
    m = jax.nn.sigmoid(jnp.einsum("nhwc,oc->nhwo", hn, p["w_h"]) + p["b_h"])
    a = att_gamma * hn + att_beta
    i = id_gamma * hn + id_beta
    return (1.0 - m) * a + m * i


def add_res_blk_ref(h, z_att, z_id, params):
    x = add_ref(h, z_att, z_id, params["add1"])
    x = relu_conv3x3(x, params["conv1_w"])
    x = add_ref(x, z_att, z_id, params["add1"])
    x = relu_conv3x3(x, params["conv2_w"])
    if params["c_in"] != params["c_out"]:
        h = add_ref(h, z_att, z_id, params["add3"])
        h = relu_conv3x3(h, params["conv3_w"])
    return x + h


if __name__ == "__main__":
    # Small but lane-dense demo shapes: c_x = 128 keeps output stores unmasked.
    N, H, W = 2, 16, 16
    c_in, c_out, c_att, c_id = 128, 64, 64, 256

    key = jax.random.PRNGKey(0)
    k_h, k_att, k_id, k_p = jax.random.split(key, 4)
    h = jax.random.normal(k_h, (N, H, W, c_in), jnp.float32)
    z_att = jax.random.normal(k_att, (N, H, W, c_att), jnp.float32)
    z_id = jax.random.normal(k_id, (N, c_id), jnp.float32)
    params = init_res_blk_params(k_p, c_in, c_out, c_att, c_id)

    ref_add = jax.block_until_ready(add_ref(h, z_att, z_id, params["add1"]))

    # 1) Default big-tile path (whole sample in one tile at this toy size).
    out1 = jax.block_until_ready(add_forward(h, z_att, z_id, params["add1"]))
    np.testing.assert_allclose(np.asarray(out1), np.asarray(ref_add),
                               rtol=5e-4, atol=5e-4)

    # 2) Multi-tile path with the VMEM h-cache (no second HBM read of h).
    out2 = jax.block_until_ready(
        add_forward(h, z_att, z_id, params["add1"], tile_rows=128))
    np.testing.assert_allclose(np.asarray(out2), np.asarray(ref_add),
                               rtol=5e-4, atol=5e-4)

    # 3) Multi-tile path with the cache disabled (h re-read from HBM).
    out3 = jax.block_until_ready(
        add_forward(h, z_att, z_id, params["add1"], tile_rows=128,
                    cache_h=False))
    np.testing.assert_allclose(np.asarray(out3), np.asarray(ref_add),
                               rtol=5e-4, atol=5e-4)

    # 4) bf16 HBM I/O (f32 compute inside the kernel) — loose tolerance.
    out4 = jax.block_until_ready(
        add_forward(h, z_att, z_id, params["add1"], tile_rows=128,
                    io_dtype=jnp.bfloat16))
    np.testing.assert_allclose(np.asarray(out4, dtype=np.float32),
                               np.asarray(ref_add), rtol=1e-1, atol=1e-1)

    # 5) Awkward HW (10x10 = 100 rows, no multiple-of-8 divisor <= 48):
    #    exercises the padded-tile fallback.
    h_p = jax.random.normal(k_h, (N, 10, 10, c_in), jnp.float32)
    z_att_p = jax.random.normal(k_att, (N, 10, 10, c_att), jnp.float32)
    out5 = jax.block_until_ready(
        add_forward(h_p, z_att_p, z_id, params["add1"], tile_rows=48))
    ref5 = jax.block_until_ready(add_ref(h_p, z_att_p, z_id, params["add1"]))
    np.testing.assert_allclose(np.asarray(out5), np.asarray(ref5),
                               rtol=5e-4, atol=5e-4)

    # Full ADDResBlk (c_in != c_out exercises the add3/conv3 branch).
    out_blk = jax.block_until_ready(
        add_res_blk_forward(h, z_att, z_id, params, tile_rows=128))
    ref_blk = jax.block_until_ready(add_res_blk_ref(h, z_att, z_id, params))
    np.testing.assert_allclose(np.asarray(out_blk), np.asarray(ref_blk),
                               rtol=2e-3, atol=2e-3)

    print("KERNEL_OK")
</pallas_src>

<mosaic_0001>
module attributes {stable_mosaic.version = 11 : i64} {
  func.func @_add_kernel(%arg0: i32, %arg1: i32, %arg2: i32, %arg3: memref<1x256x128xf32, #tpu.memory_space<vmem>>, %arg4: memref<1x256x64xf32, #tpu.memory_space<vmem>>, %arg5: memref<1x2x128xf32, #tpu.memory_space<vmem>>, %arg6: memref<64x256xf32, #tpu.memory_space<vmem>>, %arg7: memref<1x256xf32, #tpu.memory_space<vmem>>, %arg8: memref<1x128xf32, #tpu.memory_space<vmem>>, %arg9: memref<1x1xf32, #tpu.memory_space<vmem>>, %arg10: memref<1x256x128xf32, #tpu.memory_space<vmem>>, %arg11: memref<1x128xf32, #tpu.memory_space<vmem>>, %arg12: memref<1x128xf32, #tpu.memory_space<vmem>>, %arg13: memref<8x128xf32, #tpu.memory_space<vmem>>) attributes {dimension_semantics = [#tpu.dimension_semantics<parallel>, #tpu.dimension_semantics<arbitrary>, #tpu.dimension_semantics<arbitrary>], iteration_bounds = array<i64: 2, 2, 1>, scalar_prefetch = 0 : i64, scratch_operands = 3 : i64, tpu.core_type = #tpu.core_type<tc>, window_params = [{transform_indices = @transform_0, window_bounds = array<i64: 1, 256, 128>}, {transform_indices = @transform_1, window_bounds = array<i64: 1, 256, 64>}, {transform_indices = @transform_2, window_bounds = array<i64: 1, 2, 128>}, {pipeline_mode = #tpu.pipeline_mode<synchronous>, transform_indices = @transform_3, window_bounds = array<i64: 64, 256>}, {pipeline_mode = #tpu.pipeline_mode<synchronous>, transform_indices = @transform_4, window_bounds = array<i64: 1, 256>}, {pipeline_mode = #tpu.pipeline_mode<synchronous>, transform_indices = @transform_5, window_bounds = array<i64: 1, 128>}, {pipeline_mode = #tpu.pipeline_mode<synchronous>, transform_indices = @transform_6, window_bounds = array<i64: 1, 1>}, {transform_indices = @transform_7, window_bounds = array<i64: 1, 256, 128>}]} {
    %c0_i32 = arith.constant 0 : i32
    %0 = arith.cmpi eq, %arg1, %c0_i32 : i32
    %c0_i32_0 = arith.constant 0 : i32
    %1 = arith.cmpi eq, %arg2, %c0_i32_0 : i32
    %2 = arith.andi %0, %1 : i1
    %3 = arith.extui %2 : i1 to i32
    %c0_i32_1 = arith.constant 0 : i32
    %4 = arith.cmpi ne, %3, %c0_i32_1 : i32
    scf.if %4 {
      %cst = arith.constant 0.000000e+00 : f32
      %11 = vector.broadcast %cst : f32 to vector<1x128xf32>
      %c0 = arith.constant 0 : index
      %c0_5 = arith.constant 0 : index
      %12 = vector.load %arg11[%c0, %c0_5] : memref<1x128xf32, #tpu.memory_space<vmem>>, vector<1x128xf32>
      tpu.vector_store %arg11[%c0, %c0_5], %11 {strides = array<i32>} : memref<1x128xf32, #tpu.memory_space<vmem>>, vector<1x128xf32>,
      %cst_6 = arith.constant 0.000000e+00 : f32
      %13 = vector.broadcast %cst_6 : f32 to vector<1x128xf32>
      %c0_7 = arith.constant 0 : index
      %c0_8 = arith.constant 0 : index
      %14 = vector.load %arg12[%c0_7, %c0_8] : memref<1x128xf32, #tpu.memory_space<vmem>>, vector<1x128xf32>
      tpu.vector_store %arg12[%c0_7, %c0_8], %13 {strides = array<i32>} : memref<1x128xf32, #tpu.memory_space<vmem>>, vector<1x128xf32>,
    } else {
    }
    %c0_i32_2 = arith.constant 0 : i32
    %5 = arith.cmpi eq, %arg1, %c0_i32_2 : i32
    %6 = arith.extui %5 : i1 to i32
    %c0_i32_3 = arith.constant 0 : i32
    %7 = arith.cmpi ne, %6, %c0_i32_3 : i32
    scf.if %7 {
      %c0 = arith.constant 0 : index
      %c0_5 = arith.constant 0 : index
      %c0_6 = arith.constant 0 : index
      %11 = vector.load %arg3[%c0, %c0_5, %c0_6] : memref<1x256x128xf32, #tpu.memory_space<vmem>>, vector<1x256x128xf32>
      %12 = vector.shape_cast %11 : vector<1x256x128xf32> to vector<256x128xf32>
      %c0_7 = arith.constant 0 : index
      %c0_8 = arith.constant 0 : index
      %13 = vector.load %arg11[%c0_7, %c0_8] : memref<1x128xf32, #tpu.memory_space<vmem>>, vector<1x128xf32>
      %cst = arith.constant dense<0.000000e+00> : vector<128xf32>
      %14 = vector.multi_reduction <add>, %12, %cst [0] : vector<256x128xf32> to vector<128xf32>
      %15 = vector.shape_cast %14 : vector<128xf32> to vector<1x128xf32>
      %16 = arith.addf %13, %15 : vector<1x128xf32>
      %c0_9 = arith.constant 0 : index
      %c0_10 = arith.constant 0 : index
      %17 = vector.load %arg11[%c0_9, %c0_10] : memref<1x128xf32, #tpu.memory_space<vmem>>, vector<1x128xf32>
      tpu.vector_store %arg11[%c0_9, %c0_10], %16 {strides = array<i32>} : memref<1x128xf32, #tpu.memory_space<vmem>>, vector<1x128xf32>,
      %c0_11 = arith.constant 0 : index
      %c0_12 = arith.constant 0 : index
      %18 = vector.load %arg12[%c0_11, %c0_12] : memref<1x128xf32, #tpu.memory_space<vmem>>, vector<1x128xf32>
      %19 = arith.mulf %12, %12 : vector<256x128xf32>
      %cst_13 = arith.constant dense<0.000000e+00> : vector<128xf32>
      %20 = vector.multi_reduction <add>, %19, %cst_13 [0] : vector<256x128xf32> to vector<128xf32>
      %21 = vector.shape_cast %20 : vector<128xf32> to vector<1x128xf32>
      %22 = arith.addf %18, %21 : vector<1x128xf32>
      %c0_14 = arith.constant 0 : index
      %c0_15 = arith.constant 0 : index
      %23 = vector.load %arg12[%c0_14, %c0_15] : memref<1x128xf32, #tpu.memory_space<vmem>>, vector<1x128xf32>
      tpu.vector_store %arg12[%c0_14, %c0_15], %22 {strides = array<i32>} : memref<1x128xf32, #tpu.memory_space<vmem>>, vector<1x128xf32>,
    } else {
    }
    %c1_i32 = arith.constant 1 : i32
    %8 = arith.cmpi eq, %arg1, %c1_i32 : i32
    %9 = arith.extui %8 : i1 to i32
    %c0_i32_4 = arith.constant 0 : i32
    %10 = arith.cmpi ne, %9, %c0_i32_4 : i32
    scf.if %10 {
      %c0 = arith.constant 0 : index
      %c0_5 = arith.constant 0 : index
      %11 = vector.load %arg11[%c0, %c0_5] : memref<1x128xf32, #tpu.memory_space<vmem>>, vector<1x128xf32>
      %cst = arith.constant 3.906250e-03 : f32
      %12 = vector.broadcast %cst : f32 to vector<1x128xf32>
      %13 = arith.mulf %11, %12 : vector<1x128xf32>
      %c0_6 = arith.constant 0 : index
      %c0_7 = arith.constant 0 : index
      %14 = vector.load %arg12[%c0_6, %c0_7] : memref<1x128xf32, #tpu.memory_space<vmem>>, vector<1x128xf32>
      %cst_8 = arith.constant 3.906250e-03 : f32
      %15 = vector.broadcast %cst_8 : f32 to vector<1x128xf32>
      %16 = arith.mulf %14, %15 : vector<1x128xf32>
      %17 = arith.mulf %13, %13 : vector<1x128xf32>
      %18 = arith.subf %16, %17 : vector<1x128xf32>
      %cst_9 = arith.constant 9.99999974E-6 : f32
      %19 = vector.broadcast %cst_9 : f32 to vector<1x128xf32>
      %20 = arith.addf %18, %19 : vector<1x128xf32>
      %21 = math.rsqrt %20 : vector<1x128xf32>
      %c0_10 = arith.constant 0 : index
      %c0_11 = arith.constant 0 : index
      %c0_12 = arith.constant 0 : index
      %22 = vector.load %arg3[%c0_10, %c0_11, %c0_12] : memref<1x256x128xf32, #tpu.memory_space<vmem>>, vector<1x256x128xf32>
      %23 = vector.shape_cast %22 : vector<1x256x128xf32> to vector<256x128xf32>
      %24 = vector.broadcast %13 : vector<1x128xf32> to vector<256x128xf32>
      %25 = arith.subf %23, %24 : vector<256x128xf32>
      %26 = vector.broadcast %21 : vector<1x128xf32> to vector<256x128xf32>
      %27 = arith.mulf %25, %26 : vector<256x128xf32>
      %c0_13 = arith.constant 0 : index
      %c0_14 = arith.constant 0 : index
      %c0_15 = arith.constant 0 : index
      %28 = vector.load %arg4[%c0_13, %c0_14, %c0_15] : memref<1x256x64xf32, #tpu.memory_space<vmem>>, vector<1x256x64xf32>
      %29 = vector.shape_cast %28 : vector<1x256x64xf32> to vector<256x64xf32>
      %c0_16 = arith.constant 0 : index
      %c0_17 = arith.constant 0 : index
      %30 = vector.load %arg6[%c0_16, %c0_17] : memref<64x256xf32, #tpu.memory_space<vmem>>, vector<64x256xf32>
      %cst_18 = arith.constant dense<0.000000e+00> : vector<256x256xf32>
      %31 = tpu.matmul %29, %30, %cst_18 {dimension_numbers = #tpu.dot_dimension_numbers<[1], [0], [0], [1], [0, 0, 1, 1], [], []>} : vector<256x64xf32>, vector<64x256xf32>, vector<256x256xf32> -> vector<256x256xf32>
      %c0_19 = arith.constant 0 : index
      %c0_20 = arith.constant 0 : index
      %32 = vector.load %arg7[%c0_19, %c0_20] : memref<1x256xf32, #tpu.memory_space<vmem>>, vector<1x256xf32>
      %33 = vector.broadcast %32 : vector<1x256xf32> to vector<256x256xf32>
      %34 = arith.addf %31, %33 : vector<256x256xf32>
      %35 = vector.extract_strided_slice %34 {offsets = [0, 0], sizes = [256, 128], strides = [1, 1]} : vector<256x256xf32> to vector<256x128xf32>
      %36 = vector.extract_strided_slice %34 {offsets = [0, 128], sizes = [256, 128], strides = [1, 1]} : vector<256x256xf32> to vector<256x128xf32>
      %c0_21 = arith.constant 0 : index
      %c0_22 = arith.constant 0 : index
      %37 = vector.load %arg8[%c0_21, %c0_22] : memref<1x128xf32, #tpu.memory_space<vmem>>, vector<1x128xf32>
      %38 = vector.broadcast %37 : vector<1x128xf32> to vector<256x128xf32>
      %39 = arith.mulf %27, %38 : vector<256x128xf32>
      %cst_23 = arith.constant dense<0.000000e+00> : vector<256xf32>
      %40 = vector.multi_reduction <add>, %39, %cst_23 [1] : vector<256x128xf32> to vector<256xf32>
      %41 = vector.shape_cast %40 : vector<256xf32> to vector<256x1xf32>
      %c0_24 = arith.constant 0 : index
      %c0_25 = arith.constant 0 : index
      %42 = vector.load %arg9[%c0_24, %c0_25] : memref<1x1xf32, #tpu.memory_space<vmem>>, vector<1x1xf32>
      %43 = vector.broadcast %42 : vector<1x1xf32> to vector<256x1xf32>
      %44 = arith.addf %41, %43 : vector<256x1xf32>
      %45 = arith.negf %44 : vector<256x1xf32>
      %46 = math.exp %45 : vector<256x1xf32>
      %cst_26 = arith.constant 1.000000e+00 : f32
      %47 = vector.broadcast %cst_26 : f32 to vector<256x1xf32>
      %48 = arith.addf %47, %46 : vector<256x1xf32>
      %49 = arith.divf %47, %48 : vector<256x1xf32>
      %c0_27 = arith.constant 0 : index
      %c0_28 = arith.constant 0 : index
      %c0_29 = arith.constant 0 : index
      %50 = vector.load %arg5[%c0_27, %c0_28, %c0_29] : memref<1x2x128xf32, #tpu.memory_space<vmem>>, vector<1x2x128xf32>
      %51 = vector.shape_cast %50 : vector<1x2x128xf32> to vector<2x128xf32>
      %52 = vector.extract_strided_slice %51 {offsets = [0, 0], sizes = [1, 128], strides = [1, 1]} : vector<2x128xf32> to vector<1x128xf32>
      %53 = vector.extract_strided_slice %51 {offsets = [1, 0], sizes = [1, 128], strides = [1, 1]} : vector<2x128xf32> to vector<1x128xf32>
      %54 = arith.mulf %36, %27 : vector<256x128xf32>
      %55 = arith.addf %54, %35 : vector<256x128xf32>
      %56 = vector.broadcast %53 : vector<1x128xf32> to vector<256x128xf32>
      %57 = arith.mulf %56, %27 : vector<256x128xf32>
      %58 = vector.broadcast %52 : vector<1x128xf32> to vector<256x128xf32>
      %59 = arith.addf %57, %58 : vector<256x128xf32>
      %60 = arith.subf %59, %55 : vector<256x128xf32>
      %61 = vector.broadcast %49 : vector<256x1xf32> to vector<256x128xf32>
      %62 = arith.mulf %61, %60 : vector<256x128xf32>
      %63 = arith.addf %55, %62 : vector<256x128xf32>
      %c0_30 = arith.constant 0 : index
      %c0_31 = arith.constant 0 : index
      %c0_32 = arith.constant 0 : index
      %64 = vector.load %arg10[%c0_30, %c0_31, %c0_32] : memref<1x256x128xf32, #tpu.memory_space<vmem>>, vector<1x256x128xf32>
      %65 = vector.shape_cast %64 : vector<1x256x128xf32> to vector<256x128xf32>
      %66 = vector.shape_cast %63 : vector<256x128xf32> to vector<1x256x128xf32>
      tpu.vector_store %arg10[%c0_30, %c0_31, %c0_32], %66 {strides = array<i32>} : memref<1x256x128xf32, #tpu.memory_space<vmem>>, vector<1x256x128xf32>,
    } else {
    }
    return
  }
  func.func @transform_0(%arg0: i32, %arg1: i32, %arg2: i32) -> (i32, i32, i32) {
    %c0_i32 = arith.constant 0 : i32
    %c0_i32_0 = arith.constant 0 : i32
    return %arg0, %arg2, %c0_i32 : i32, i32, i32
  }
  func.func @transform_1(%arg0: i32, %arg1: i32, %arg2: i32) -> (i32, i32, i32) {
    %0 = arith.muli %arg2, %arg1 : i32
    %c0_i32 = arith.constant 0 : i32
    %c0_i32_0 = arith.constant 0 : i32
    return %arg0, %0, %c0_i32 : i32, i32, i32
  }
  func.func @transform_2(%arg0: i32, %arg1: i32, %arg2: i32) -> (i32, i32, i32) {
    %c0_i32 = arith.constant 0 : i32
    %c0_i32_0 = arith.constant 0 : i32
    %c0_i32_1 = arith.constant 0 : i32
    return %arg0, %c0_i32, %c0_i32_0 : i32, i32, i32
  }
  func.func @transform_3(%arg0: i32, %arg1: i32, %arg2: i32) -> (i32, i32) {
    %c0_i32 = arith.constant 0 : i32
    %c0_i32_0 = arith.constant 0 : i32
    %c0_i32_1 = arith.constant 0 : i32
    return %c0_i32, %c0_i32_0 : i32, i32
  }
  func.func @transform_4(%arg0: i32, %arg1: i32, %arg2: i32) -> (i32, i32) {
    %c0_i32 = arith.constant 0 : i32
    %c0_i32_0 = arith.constant 0 : i32
    %c0_i32_1 = arith.constant 0 : i32
    return %c0_i32, %c0_i32_0 : i32, i32
  }
  func.func @transform_5(%arg0: i32, %arg1: i32, %arg2: i32) -> (i32, i32) {
    %c0_i32 = arith.constant 0 : i32
    %c0_i32_0 = arith.constant 0 : i32
    %c0_i32_1 = arith.constant 0 : i32
    return %c0_i32, %c0_i32_0 : i32, i32
  }
  func.func @transform_6(%arg0: i32, %arg1: i32, %arg2: i32) -> (i32, i32) {
    %c0_i32 = arith.constant 0 : i32
    %c0_i32_0 = arith.constant 0 : i32
    %c0_i32_1 = arith.constant 0 : i32
    return %c0_i32, %c0_i32_0 : i32, i32
  }
  func.func @transform_7(%arg0: i32, %arg1: i32, %arg2: i32) -> (i32, i32, i32) {
    %0 = arith.muli %arg2, %arg1 : i32
    %c0_i32 = arith.constant 0 : i32
    %c0_i32_0 = arith.constant 0 : i32
    return %arg0, %0, %c0_i32 : i32, i32, i32
  }
}

</mosaic_0001>

<bundles_post_ra>
// kernel: tpu_custom_call.1
= control target key start
LH: loop header
LB: loop body
LE: loop exit
PB: predicated region body
PF: predicated region fallthrough
CT: control target
= control target key end

     0   :  { %s3404_s0 = inlined_call_operand.vmem [shape: f32[2,256,128], index: 0, kind: input, shape index: {}]   ;;  %s3405_s1 = inlined_call_operand.vmem [shape: f32[2,256,64], index: 1, kind: input, shape index: {}]   ;;  %s3406_s2 = inlined_call_operand.vmem [shape: f32[2,2,128], index: 2, kind: input, shape index: {}]   ;;  %s3407_s3 = inlined_call_operand.vmem [shape: f32[64,256], index: 3, kind: input, shape index: {}]   ;;  %s3408_s4 = inlined_call_operand.vmem [shape: f32[1,256], index: 4, kind: input, shape index: {}]   ;;  %s3409_s5 = inlined_call_operand.vmem [shape: f32[1,128], index: 5, kind: input, shape index: {}]   ;;  %s3410_s6 = inlined_call_operand.<no memory space> [shape: f32[1,1], index: 6, kind: input, shape index: {}]   ;;  %s3411_s7 = inlined_call_operand.hbm [shape: f32[2,256,128], index: 7, kind: output, shape index: {}]  }
   0x1   :  { %v12_v0 = vstv %s3410_s6 }
   0x2   :  { %13 = vst [vmem:[#allocation5] sm:$0x1] %v12_v0 }
   0x3   :  { %14 = vsyncpa [#allocation7], 0 }
   0x4   :  { %16 = vsyncpa [#allocation7 + $0x1], 0  ;;  %s2426_s26 = smov 0   ;;  %s2428_s27 = smov 0  }
   0x5   :  { %s2430_s28 = smov 0   ;;  %s2432_s29 = smov 0  }
   0x6   :  { %s2434_s30 = smov 0   ;;  %s2436_s8 = smov 0  }
   0x7   :  { %s2438_s9 = smov 0   ;;  %s2440_s10 = smov 0  }
   0x8 LB: > { %3434 = sst [smem:[#allocation9_spill]] %s2371_s9  ;;  %s1960_s6 = sadd.s32 4294967295, %s2375_s10   ;;  %s2375_s10 = sphi %s2440_s10, %s22_s10   ;;  %s2371_s9 = sphi %s2438_s9, %s3479_s9   ;;  %s2367_s8 = sphi %s2436_s8, %s3484_s8   ;;  %s2363_s30 = sphi %s2434_s30, %s3477_s30   ;;  %s2359_s29 = sphi %s2432_s29, %s3483_s29   ;;  %s2355_s28 = sphi %s2430_s28, %s3482_s28   ;;  %s2351_s27 = sphi %s2428_s27, %s3481_s27   ;;  %s2347_s26 = sphi %s2426_s26, %s3480_s26  }
   0x9   : > { %s1961_s11 = sadd.s32 4294967294, %s2375_s10   ;;  %s37_s12 = sadd.s32 1, %s2367_s8 }
   0xa   : > { %p39_p0 = scmp.ge.s32.totalorder %s37_s12, 2  ;;  %s41_s13 = sadd.s32 1, %s2371_s9 }
   0xb   : > { %p230_p1 = scmp.ne.s32.totalorder %s2355_s28, %s2351_s27  ;;  %p231_p2 = scmp.eq.s32.totalorder %s1960_s6, 3 }
   0xc   : > { %s3486_s12 = smov (%p39_p0, %s37_s12), 0  ;;  %s3488_s13 = smov (!%p39_p0, %s41_s13), %s2371_s9 }
   0xd   : > { %3435 = sst [smem:[#allocation10_spill]] %s3486_s12  ;;  %p2475_p3 = por %p231_p2, %p230_p1 }
   0xe   : > { %p236_p4 = scmp.ne.s32.totalorder %s2351_s27, %s2347_s26  ;;  %p43_p5 = scmp.ge.s32.totalorder %s3488_s13, 2 }
   0xf   : > { %p237_p6 = scmp.eq.s32.totalorder %s1961_s11, 3  ;;  %p1964_p7 = scmp.ge.s32.totalorder %s2375_s10, 1 }
  0x10   : > { %p302_p8 = scmp.lt.s32.totalorder %s2375_s10, 5  ;;  %s3490_s13 = smov (%p43_p5, %s3488_s13), 0 }
  0x11   : > { %3437 = sst [smem:[#allocation11_spill]] %s3490_s13  ;;  %p2485_p9 = por %p237_p6, %p236_p4 }
  0x12   : > { %p303_p10 = pnand %p1964_p7, %p302_p8  ;;  %s215_s16 = ssub.s32 %s2371_s9, %s3490_s13 }
  0x13   : > { %s220_s17 = sadd.s32 1, %s2355_s28  ;;  %p218_p11 = scmp.eq.s32.totalorder %s215_s16, 0 }
  0x14   : > { %306 = sbr.rel (%p303_p10) target bundleno = 557 (0x22d), region = 48  ;;  %s3414_s19 = sand.u32 (!%p303_p10), 1, %s2351_s27  }
  0x15   : > { %s2493_s18 = scalar_select %p218_p11, %s2355_s28, %s220_s17  }
  0x16   : > { %p353_p12 = scmp.lt.s32.totalorder (!%p303_p10), %s2363_s30, 1  ;;  %s1965_s20 = sshll.u32 (!%p303_p10), %s3414_s19, 8 }
  0x17   : > { %p380_p13 = scmp.eq.s32.totalorder (!%p303_p10), %s2359_s29, 0  ;;  %s2516_s19 = scalar_lea.vmem (!%p303_p10), [#allocation6], %s1965_s20 }
  0x1b   : > { %s354_s21 = scalar_select %p353_p12, %s2363_s30, 1 }
  0x1c   : > { %385 = sbr.rel (!%p380_p13) target bundleno = 35 (0x23), region = 52  ;;  %v2377_v1 = vmov (%p380_p13), 0.0  }
  0x1d   : > { %s2045_s22 = sshll.u32 %s354_s21, 8  ;;  %s1970_s23 = sshll.u32 %s354_s21, 1  ;;  %386 = vst [vmem:[#allocation2] sm:$0x1] (%p380_p13), %v2377_v1  ;;  %387 = vst [vmem:[#allocation3] sm:$0x1] (%p380_p13), %v2377_v1 }
  0x1e   : > { %s2504_s6 = scalar_lea.vmem %s3404_s0, %s2045_s22  ;;  %s2509_s17 = scalar_lea.vmem %s3405_s1, %s2045_s22 }
  0x1f   : > { %s2514_s9 = scalar_lea.vmem %s3406_s2, %s1970_s23 }
  0x23 PF: > { %p1972_p0 = scmp.ne.s32.totalorder %s2359_s29, 0 }
  0x24   : > { %v391_v2 = vld [vmem:[%s2504_s6] sm:$0xff] (!%p1972_p0)  ;;  %v392_v3 = vld [vmem:[%s2504_s6 + $0x8] sm:$0xff] (!%p1972_p0)  ;;  %v393_v4 = vld [vmem:[%s2504_s6 + $0x10] sm:$0xff] (!%p1972_p0) }
  0x25   : > { %390 = sbr.rel (%p1972_p0) target bundleno = 116 (0x74), region = 56  ;;  %v394_v5 = vld [vmem:[%s2504_s6 + $0x18] sm:$0xff] (!%p1972_p0)  ;;  %v424_v6 = vadd.f32 (!%p1972_p0), %v392_v3, %v391_v2  ;;  %v464_v7 = vmul.f32 (!%p1972_p0), %v391_v2, %v391_v2  ;;  %v465_v8 = vmul.f32 (!%p1972_p0), %v392_v3, %v392_v3  ;;  %v466_v9 = vmul.f32 (!%p1972_p0), %v393_v4, %v393_v4  ;;  %v395_v10 = vld [vmem:[%s2504_s6 + $0x20] sm:$0xff] (!%p1972_p0)  ;;  %v396_v14 = vld [vmem:[%s2504_s6 + $0x28] sm:$0xff] (!%p1972_p0) }
  0x26   : > { %v467_v12 = vmul.f32 (!%p1972_p0), %v394_v5, %v394_v5  ;;  %v468_v16 = vmul.f32 (!%p1972_p0), %v395_v10, %v395_v10  ;;  %v397_v18 = vld [vmem:[%s2504_s6 + $0x30] sm:$0xff] (!%p1972_p0)  ;;  %v469_v20 = vmul.f32 (!%p1972_p0), %v396_v14, %v396_v14  ;;  %v398_v22 = vld [vmem:[%s2504_s6 + $0x38] sm:$0xff] (!%p1972_p0)  ;;  %v399_v26 = vld [vmem:[%s2504_s6 + $0x40] sm:$0xff] (!%p1972_p0) }
  0x27   : > { %v425_v11 = vadd.f32 (!%p1972_p0), %v424_v6, %v393_v4  ;;  %v496_v13 = vadd.f32 (!%p1972_p0), %v465_v8, %v464_v7  ;;  %v470_v24 = vmul.f32 (!%p1972_p0), %v397_v18, %v397_v18  ;;  %v471_v28 = vmul.f32 (!%p1972_p0), %v398_v22, %v398_v22  ;;  %v400_v30 = vld [vmem:[%s2504_s6 + $0x48] sm:$0xff] (!%p1972_p0)  ;;  %v401_v34 = vld [vmem:[%s2504_s6 + $0x50] sm:$0xff] (!%p1972_p0)  ;;  %v402_v38 = vld [vmem:[%s2504_s6 + $0x58] sm:$0xff] (!%p1972_p0) }
  0x28   : > { %v472_v32 = vmul.f32 (!%p1972_p0), %v399_v26, %v399_v26  ;;  %v473_v36 = vmul.f32 (!%p1972_p0), %v400_v30, %v400_v30  ;;  %v474_v40 = vmul.f32 (!%p1972_p0), %v401_v34, %v401_v34  ;;  %v403_v42 = vld [vmem:[%s2504_s6 + $0x60] sm:$0xff] (!%p1972_p0)  ;;  %v475_v44 = vmul.f32 (!%p1972_p0), %v402_v38, %v402_v38  ;;  %v404_v46 = vld [vmem:[%s2504_s6 + $0x68] sm:$0xff] (!%p1972_p0)  ;;  %v405_v50 = vld [vmem:[%s2504_s6 + $0x70] sm:$0xff] (!%p1972_p0) }
  0x29   : > { %v426_v15 = vadd.f32 (!%p1972_p0), %v425_v11, %v394_v5  ;;  %v497_v17 = vadd.f32 (!%p1972_p0), %v496_v13, %v466_v9  ;;  %v476_v48 = vmul.f32 (!%p1972_p0), %v403_v42, %v403_v42  ;;  %v477_v52 = vmul.f32 (!%p1972_p0), %v404_v46, %v404_v46  ;;  %v406_v54 = vld [vmem:[%s2504_s6 + $0x78] sm:$0xff] (!%p1972_p0)  ;;  %v407_v58 = vld [vmem:[%s2504_s6 + $0x80] sm:$0xff] (!%p1972_p0)  ;;  %v408_v62 = vld [vmem:[%s2504_s6 + $0x88] sm:$0xff] (!%p1972_p0) }
  0x2a   : > { %v478_v56 = vmul.f32 (!%p1972_p0), %v405_v50, %v405_v50  ;;  %v479_v60 = vmul.f32 (!%p1972_p0), %v406_v54, %v406_v54  ;;  %v480_v0 = vmul.f32 (!%p1972_p0), %v407_v58, %v407_v58  ;;  %v409_v2 = vld [vmem:[%s2504_s6 + $0x90] sm:$0xff] (!%p1972_p0)  ;;  %v481_v4 = vmul.f32 (!%p1972_p0), %v408_v62, %v408_v62  ;;  %v410_v6 = vld [vmem:[%s2504_s6 + $0x98] sm:$0xff] (!%p1972_p0) }
  0x2b   : > { %v427_v19 = vadd.f32 (!%p1972_p0), %v426_v15, %v395_v10  ;;  %v498_v21 = vadd.f32 (!%p1972_p0), %v497_v17, %v467_v12  ;;  %v482_v8 = vmul.f32 (!%p1972_p0), %v409_v2, %v409_v2  ;;  %v411_v10 = vld [vmem:[%s2504_s6 + $0xa0] sm:$0xff] (!%p1972_p0)  ;;  %v483_v12 = vmul.f32 (!%p1972_p0), %v410_v6, %v410_v6 }
  0x2d   : > { %v428_v23 = vadd.f32 %v427_v19, %v396_v14  ;;  %v499_v25 = vadd.f32 %v498_v21, %v468_v16  ;;  %v412_v14 = vld [vmem:[%s2504_s6 + $0xa8] sm:$0xff]  ;;  %v484_v16 = vmul.f32 %v411_v10, %v411_v10 }
  0x2f   : > { %v429_v27 = vadd.f32 %v428_v23, %v397_v18  ;;  %v500_v29 = vadd.f32 %v499_v25, %v469_v20  ;;  %v413_v18 = vld [vmem:[%s2504_s6 + $0xb0] sm:$0xff]  ;;  %v485_v20 = vmul.f32 %v412_v14, %v412_v14 }
  0x31   : > { %v430_v31 = vadd.f32 %v429_v27, %v398_v22  ;;  %v501_v33 = vadd.f32 %v500_v29, %v470_v24  ;;  %v414_v22 = vld [vmem:[%s2504_s6 + $0xb8] sm:$0xff]  ;;  %v486_v24 = vmul.f32 %v413_v18, %v413_v18 }
  0x33   : > { %v431_v35 = vadd.f32 %v430_v31, %v399_v26  ;;  %v502_v37 = vadd.f32 %v501_v33, %v471_v28  ;;  %v415_v26 = vld [vmem:[%s2504_s6 + $0xc0] sm:$0xff]  ;;  %v487_v28 = vmul.f32 %v414_v22, %v414_v22 }
  0x35   : > { %v432_v39 = vadd.f32 %v431_v35, %v400_v30  ;;  %v503_v41 = vadd.f32 %v502_v37, %v472_v32  ;;  %v416_v30 = vld [vmem:[%s2504_s6 + $0xc8] sm:$0xff]  ;;  %v488_v32 = vmul.f32 %v415_v26, %v415_v26 }
  0x37   : > { %v433_v43 = vadd.f32 %v432_v39, %v401_v34  ;;  %v504_v45 = vadd.f32 %v503_v41, %v473_v36  ;;  %v417_v34 = vld [vmem:[%s2504_s6 + $0xd0] sm:$0xff]  ;;  %v489_v36 = vmul.f32 %v416_v30, %v416_v30 }
  0x39   : > { %v434_v47 = vadd.f32 %v433_v43, %v402_v38  ;;  %v505_v49 = vadd.f32 %v504_v45, %v474_v40  ;;  %v418_v38 = vld [vmem:[%s2504_s6 + $0xd8] sm:$0xff]  ;;  %v490_v40 = vmul.f32 %v417_v34, %v417_v34 }
  0x3b   : > { %v435_v51 = vadd.f32 %v434_v47, %v403_v42  ;;  %v506_v53 = vadd.f32 %v505_v49, %v475_v44  ;;  %v419_v42 = vld [vmem:[%s2504_s6 + $0xe0] sm:$0xff]  ;;  %v491_v44 = vmul.f32 %v418_v38, %v418_v38 }
  0x3d   : > { %v436_v55 = vadd.f32 %v435_v51, %v404_v46  ;;  %v507_v57 = vadd.f32 %v506_v53, %v476_v48  ;;  %v420_v46 = vld [vmem:[%s2504_s6 + $0xe8] sm:$0xff]  ;;  %v492_v48 = vmul.f32 %v419_v42, %v419_v42 }
  0x3f   : > { %v437_v59 = vadd.f32 %v436_v55, %v405_v50  ;;  %v508_v61 = vadd.f32 %v507_v57, %v477_v52  ;;  %v421_v50 = vld [vmem:[%s2504_s6 + $0xf0] sm:$0xff]  ;;  %v493_v52 = vmul.f32 %v420_v46, %v420_v46 }
  0x41   : > { %v438_v63 = vadd.f32 %v437_v59, %v406_v54  ;;  %v509_v1 = vadd.f32 %v508_v61, %v478_v56  ;;  %v422_v54 = vld [vmem:[%s2504_s6 + $0xf8] sm:$0xff]  ;;  %v494_v56 = vmul.f32 %v421_v50, %v421_v50 }
  0x42   : > { %v495_v59 = vmul.f32 %v422_v54, %v422_v54 }
  0x43   : > { %v439_v3 = vadd.f32 %v438_v63, %v407_v58  ;;  %v510_v5 = vadd.f32 %v509_v1, %v479_v60 }
  0x45   : > { %v440_v7 = vadd.f32 %v439_v3, %v408_v62  ;;  %v511_v9 = vadd.f32 %v510_v5, %v480_v0 }
  0x47   : > { %v441_v11 = vadd.f32 %v440_v7, %v409_v2  ;;  %v512_v13 = vadd.f32 %v511_v9, %v481_v4 }
  0x49   : > { %v442_v15 = vadd.f32 %v441_v11, %v410_v6  ;;  %v513_v17 = vadd.f32 %v512_v13, %v482_v8  ;;  %v423_v8 = vld [vmem:[#allocation2] sm:$0x1]  ;;  %v463_v13 = vld [vmem:[#allocation3] sm:$0x1] }
  0x4b   : > { %v443_v19 = vadd.f32 %v442_v15, %v411_v10  ;;  %v514_v21 = vadd.f32 %v513_v17, %v483_v12 }
  0x4d   : > { %v444_v23 = vadd.f32 %v443_v19, %v412_v14  ;;  %v515_v25 = vadd.f32 %v514_v21, %v484_v16 }
  0x4f   : > { %v445_v27 = vadd.f32 %v444_v23, %v413_v18  ;;  %v516_v29 = vadd.f32 %v515_v25, %v485_v20 }
  0x51   : > { %v446_v31 = vadd.f32 %v445_v27, %v414_v22  ;;  %v517_v33 = vadd.f32 %v516_v29, %v486_v24 }
  0x53   : > { %v447_v35 = vadd.f32 %v446_v31, %v415_v26  ;;  %v518_v37 = vadd.f32 %v517_v33, %v487_v28 }
  0x55   : > { %v448_v39 = vadd.f32 %v447_v35, %v416_v30  ;;  %v519_v41 = vadd.f32 %v518_v37, %v488_v32 }
  0x57   : > { %v449_v43 = vadd.f32 %v448_v39, %v417_v34  ;;  %v520_v45 = vadd.f32 %v519_v41, %v489_v36 }
  0x59   : > { %v450_v47 = vadd.f32 %v449_v43, %v418_v38  ;;  %v521_v49 = vadd.f32 %v520_v45, %v490_v40 }
  0x5b   : > { %v451_v51 = vadd.f32 %v450_v47, %v419_v42  ;;  %v522_v53 = vadd.f32 %v521_v49, %v491_v44 }
  0x5d   : > { %v452_v55 = vadd.f32 %v451_v51, %v420_v46  ;;  %v523_v57 = vadd.f32 %v522_v53, %v492_v48 }
  0x5f   : > { %v453_v58 = vadd.f32 %v452_v55, %v421_v50  ;;  %v524_v60 = vadd.f32 %v523_v57, %v493_v52 }
  0x61   : > { %v454_v61 = vadd.f32 %v453_v58, %v422_v54  ;;  %v525_v62 = vadd.f32 %v524_v60, %v494_v56 }
  0x63   : > { %v455_v63 = vrot.slane %v454_v61, 4  ;;  %v526_v0 = vadd.f32 %v525_v62, %v495_v59 }
  0x65   : > { %v456_v1 = vadd.f32 %v455_v63, %v454_v61  ;;  %v527_v2 = vrot.slane %v526_v0, 4 }
  0x67   : > { %v457_v3 = vrot.slane %v456_v1, 2  ;;  %v528_v4 = vadd.f32 %v527_v2, %v526_v0 }
  0x69   : > { %v458_v5 = vadd.f32 %v457_v3, %v456_v1  ;;  %v529_v6 = vrot.slane %v528_v4, 2 }
  0x6b   : > { %v459_v7 = vrot.slane %v458_v5, 1  ;;  %v530_v9 = vadd.f32 %v529_v6, %v528_v4 }
  0x6d   : > { %v460_v10 = vadd.f32 %v459_v7, %v458_v5  ;;  %v531_v11 = vrot.slane %v530_v9, 1 }
  0x6f   : > { %v461_v12 = vadd.f32 %v460_v10, %v423_v8  ;;  %v532_v14 = vadd.f32 %v531_v11, %v530_v9 }
  0x71   : > { %462 = vst [vmem:[#allocation2] sm:$0x1] %v461_v12  ;;  %v533_v15 = vadd.f32 %v532_v14, %v463_v13 }
  0x73   : > { %534 = vst [vmem:[#allocation3] sm:$0x1] %v533_v15 }
  0x74 PF: > { %p1973_p1 = scmp.ne.s32.totalorder %s2359_s29, 1 }
  0x76   : > { %538 = sbr.rel (%p1973_p1) target bundleno = 531 (0x213), region = 60 }
  0x7d   : > { %v539_v16 = vld [vmem:[#allocation2] sm:$0x1]  ;;  %v541_v17 = vld [vmem:[#allocation3] sm:$0x1]  ;;  %v580_v20 = vlaneseq  ;;  %v2378_v21 = vmov 0.0   ;;  %v688_v25 = vld [vmem:[%s3407_s3 + $0x8] sm:$0xff] }
  0x7e   : > { %v540_v18 = vmul.f32 0.00390625, %v539_v16  ;;  %v542_v19 = vmul.f32 0.00390625, %v541_v17  ;;  %876 = vmatprep.mubr.f32.mxu0 %v2378_v21  ;;  %972 = vmatprep.mubr.f32.mxu1 %v2378_v21  ;;  %v690_v26 = vld [vmem:[%s3407_s3 + $0x18] sm:$0xff]  ;;  %v687_v27 = vld [vmem:[%s3407_s3] sm:$0xff]  ;;  %v689_v29 = vld [vmem:[%s3407_s3 + $0x10] sm:$0xff]  ;;  %vm715_vm0 = vcmask 523264  }
  0x7f   : > { %v2554_v24 = vshrl.u32 %v580_v20, 7  ;;  %v2049_v28 = vpack.c.bf16 %v690_v26, %v688_v25  ;;  %v2051_v31 = vpack.c.bf16 %v689_v29, %v687_v27  ;;  %v692_v32 = vld [vmem:[%s3407_s3 + $0x28] sm:$0xff]  ;;  %v694_v33 = vld [vmem:[%s3407_s3 + $0x38] sm:$0xff]  ;;  %v691_v34 = vld [vmem:[%s3407_s3 + $0x20] sm:$0xff] }
  0x80   : > { %v543_v22 = vmul.f32 %v540_v18, %v540_v18  ;;  %v693_v36 = vld [vmem:[%s3407_s3 + $0x30] sm:$0xff]  ;;  %v696_v37 = vld [vmem:[%s3407_s3 + $0x48] sm:$0xff]  ;;  %v698_v38 = vld [vmem:[%s3407_s3 + $0x58] sm:$0xff]  ;;  %v2053_v39 = vpack.c.bf16 %v694_v33, %v692_v32 }
  0x81   : > { %2050 = vmatprep.subr.bf16.mxu0 %v2049_v28  ;;  %v2578_v35 = vsub.s32 0, %v2554_v24  ;;  %2065 = vmatprep.subr.bf16.mxu1 %v2049_v28  ;;  %v695_v40 = vld [vmem:[%s3407_s3 + $0x40] sm:$0xff]  ;;  %v697_v41 = vld [vmem:[%s3407_s3 + $0x50] sm:$0xff]  ;;  %v2055_v42 = vpack.c.bf16 %v693_v36, %v691_v34  ;;  %v2057_v43 = vpack.c.bf16 %v698_v38, %v696_v37  ;;  %v700_v44 = vld [vmem:[%s3407_s3 + $0x68] sm:$0xff] }
  0x82   : > { %v544_v23 = vsub.f32 %v542_v19, %v543_v22  ;;  %2052 = vmatpush1.bf16.msra.mxu0 %v2051_v31  ;;  %2069 = vmatpush1.bf16.msra.mxu1 %v2051_v31  ;;  %v702_v45 = vld [vmem:[%s3407_s3 + $0x78] sm:$0xff]  ;;  %v549_v47 = vld [vmem:[%s2504_s6 + $0x10] sm:$0xff]  ;;  %v547_v48 = vld [vmem:[%s2504_s6] sm:$0xff]  ;;  %v2059_v50 = vpack.c.bf16 %v697_v41, %v695_v40 }
  0x83   : > { %v2602_v46 = vrot.slane %v540_v18, %v2578_v35  ;;  %2054 = vmatprep.subr.bf16.mxu0 %v2053_v39  ;;  %v550_v49 = vld [vmem:[%s2504_s6 + $0x18] sm:$0xff]  ;;  %v548_v51 = vld [vmem:[%s2504_s6 + $0x8] sm:$0xff]  ;;  %v2061_v52 = vpack.c.bf16 %v702_v45, %v700_v44  ;;  %v699_v53 = vld [vmem:[%s3407_s3 + $0x60] sm:$0xff]  ;;  %2066 = vmatprep.subr.bf16.mxu1 %v2053_v39 }
  0x84   : > { %v545_v30 = vadd.f32 1e-05, %v544_v23  ;;  %v701_v54 = vld [vmem:[%s3407_s3 + $0x70] sm:$0xff]  ;;  %v552_v59 = vld [vmem:[%s2504_s6 + $0x28] sm:$0xff]  ;;  %v551_v60 = vld [vmem:[%s2504_s6 + $0x20] sm:$0xff] }
  0x85   : > { %v587_v55 = vsub.f32 %v549_v47, %v2602_v46  ;;  %v585_v56 = vsub.f32 %v547_v48, %v2602_v46  ;;  %v588_v57 = vsub.f32 %v550_v49, %v2602_v46  ;;  %v586_v58 = vsub.f32 %v548_v51, %v2602_v46  ;;  %v2626_v0 = vld [vmem:[%s3409_s5] ss:$0 sm:$0xff]  ;;  %v554_v7 = vld [vmem:[%s2504_s6 + $0x38] sm:$0xff]  ;;  %v553_v8 = vld [vmem:[%s2504_s6 + $0x30] sm:$0xff] }
  0x86   : > { %2151 = vrsqrt.f32 %v545_v30  ;;  %2056 = vmatpush1.bf16.msra.mxu0 %v2055_v42  ;;  %2070 = vmatpush1.bf16.msra.mxu1 %v2055_v42  ;;  %v2063_v61 = vpack.c.bf16 %v701_v54, %v699_v53  ;;  %v590_v1 = vsub.f32 %v552_v59, %v2602_v46  ;;  %v589_v2 = vsub.f32 %v551_v60, %v2602_v46  ;;  %v655_v9 = vld [vmem:[%s2509_s17] sm:$0xff]  ;;  %v556_v18 = vld [vmem:[%s2504_s6 + $0x48] sm:$0xff]  ;;  %v558_v29 = vld [vmem:[%s2504_s6 + $0x58] sm:$0xff] }
  0x87   : > { %2058 = vmatprep.subr.bf16.mxu0 %v2057_v43  ;;  %2067 = vmatprep.subr.bf16.mxu1 %v2057_v43  ;;  %v592_v13 = vsub.f32 %v554_v7, %v2602_v46  ;;  %v591_v14 = vsub.f32 %v553_v8, %v2602_v46  ;;  %v671_v15 = vld [vmem:[%s2509_s17 + $0x80] sm:$0xff]  ;;  %v656_v22 = vld [vmem:[%s2509_s17 + $0x8] sm:$0xff]  ;;  %v594_v25 = vsub.f32 %v556_v18, %v2602_v46  ;;  %v557_v31 = vld [vmem:[%s2504_s6 + $0x50] sm:$0xff] }
  0x88   : > { %v555_v20 = vld [vmem:[%s2504_s6 + $0x40] sm:$0xff]  ;;  %v657_v32 = vld [vmem:[%s2509_s17 + $0x10] sm:$0xff]  ;;  %v596_v34 = vsub.f32 %v558_v29, %v2602_v46  ;;  %v595_v36 = vsub.f32 %v557_v31, %v2602_v46  ;;  %v672_v37 = vld [vmem:[%s2509_s17 + $0x88] sm:$0xff] }
  0x89   : > { %v593_v26 = vsub.f32 %v555_v20, %v2602_v46  ;;  %v560_v39 = vld [vmem:[%s2504_s6 + $0x68] sm:$0xff]  ;;  %v559_v42 = vld [vmem:[%s2504_s6 + $0x60] sm:$0xff]  ;;  %v658_v43 = vld [vmem:[%s2509_s17 + $0x18] sm:$0xff] }
  0x8a   : > { %2060 = vmatpush1.bf16.msra.mxu0 %v2059_v50  ;;  %2071 = vmatpush1.bf16.msra.mxu1 %v2059_v50  ;;  %v598_v45 = vsub.f32 %v560_v39, %v2602_v46  ;;  %v597_v47 = vsub.f32 %v559_v42, %v2602_v46  ;;  %v673_v48 = vld [vmem:[%s2509_s17 + $0x90] sm:$0xff]  ;;  %v562_v50 = vld [vmem:[%s2504_s6 + $0x78] sm:$0xff]  ;;  %v659_v54 = vld [vmem:[%s2509_s17 + $0x20] sm:$0xff] }
  0x8b   : > { %2062 = vmatprep.subr.bf16.mxu0 %v2061_v52  ;;  %2068 = vmatprep.subr.bf16.mxu1 %v2061_v52  ;;  %v561_v53 = vld [vmem:[%s2504_s6 + $0x70] sm:$0xff]  ;;  %v564_v60 = vld [vmem:[%s2504_s6 + $0x88] sm:$0xff]  ;;  %v567_v31 = vld [vmem:[%s2504_s6 + $0xa0] sm:$0xff] }
  0x8c   : > { %v602_v8 = vsub.f32 %v564_v60, %v2602_v46 }
  0x8e   : > { %2064 = vmatpush1.bf16.msra.mxu0 %v2063_v61  ;;  %2072 = vmatpush1.bf16.msra.mxu1 %v2063_v61 }
  0x90   : > { %v2152_v62 = vpop.eup %2151 }
  0x91   : > { %v2621_v63 = vrot.slane %v2152_v62, %v2578_v35  ;;  %1974 = vmatmul.mubr.msk.f32.vlgmr.msra.gmra.mrb[0].mxu0 %vm715_vm0, %v655_v9  ;;  %1990 = vmatmul.mubr.msk.f32.vlgmr.msra.gmra.mrb[0].mxu1 %vm715_vm0, %v671_v15 }
  0x92   : > { %882 = vmatprep.mubr.f32.mxu0 %v2378_v21  ;;  %978 = vmatprep.mubr.f32.mxu1 %v2378_v21 }
  0x93   : > { %v2631_v3 = vmul.f32 %v2621_v63, %v587_v55  ;;  %v2634_v4 = vmul.f32 %v2621_v63, %v585_v56  ;;  %v2637_v5 = vmul.f32 %v2621_v63, %v588_v57  ;;  %v2640_v6 = vmul.f32 %v2621_v63, %v586_v58  ;;  %v674_v58 = vld [vmem:[%s2509_s17 + $0x98] sm:$0xff] }
  0x94   : > { %v2650_v12 = vmul.f32 %v2621_v63, %v590_v1  ;;  %v2662_v19 = vmul.f32 %v2621_v63, %v589_v2  ;;  %v2669_v23 = vmul.f32 %v2621_v63, %v592_v13  ;;  %v2680_v30 = vmul.f32 %v2621_v63, %v591_v14  ;;  %v563_v1 = vld [vmem:[%s2504_s6 + $0x80] sm:$0xff]  ;;  %v660_v2 = vld [vmem:[%s2509_s17 + $0x28] sm:$0xff]  ;;  %v566_v13 = vld [vmem:[%s2504_s6 + $0x98] sm:$0xff] }
  0x95   : > { %v1078_v10 = vmul.f32 %v2626_v0, %v2631_v3  ;;  %v1076_v11 = vmul.f32 %v2626_v0, %v2634_v4  ;;  %v1079_v16 = vmul.f32 %v2626_v0, %v2637_v5  ;;  %v1077_v17 = vmul.f32 %v2626_v0, %v2640_v6  ;;  %1975 = vmatmul.mubr.msk.f32.gmra.mrb[2].mxu0 %vm715_vm0, %v656_v22 }
  0x96   : > { %v1081_v27 = vmul.f32 %v2626_v0, %v2650_v12  ;;  %v1080_v28 = vmul.f32 %v2626_v0, %v2662_v19  ;;  %888 = vmatprep.mubr.f32.mxu0 %v2378_v21  ;;  %v2687_v33 = vmul.f32 %v2621_v63, %v594_v25  ;;  %v1083_v38 = vmul.f32 %v2626_v0, %v2669_v23  ;;  %v676_v25 = vld [vmem:[%s2509_s17 + $0xa8] sm:$0xff] }
  0x97   : > { %1112 = vadd.xlane.f32.xlu1 %v1078_v10  ;;  %1108 = vadd.xlane.f32.xlu0 %v1076_v11  ;;  %v1082_v40 = vmul.f32 %v2626_v0, %v2680_v30  ;;  %v2699_v41 = vmul.f32 %v2621_v63, %v593_v26  ;;  %v2712_v49 = vmul.f32 %v2621_v63, %v596_v34  ;;  %v675_v10 = vld [vmem:[%s2509_s17 + $0xa0] sm:$0xff] }
  0x98   : > { %1991 = vmatmul.mubr.msk.f32.gmra.mrb[2].mxu1 %vm715_vm0, %v672_v37  ;;  %v1085_v44 = vmul.f32 %v2626_v0, %v2687_v33  ;;  %v2718_v52 = vmul.f32 %v2621_v63, %v595_v36  ;;  %v2726_v55 = vmul.f32 %v2621_v63, %v598_v45  ;;  %v600_v56 = vsub.f32 %v562_v50, %v2602_v46  ;;  %v663_v45 = vld [vmem:[%s2509_s17 + $0x40] sm:$0xff] }
  0x99   : > { %1976 = vmatmul.mubr.msk.f32.gmra.mrb[4].mxu0 %vm715_vm0, %v657_v32  ;;  %v1084_v51 = vmul.f32 %v2626_v0, %v2699_v41  ;;  %984 = vmatprep.mubr.f32.mxu1 %v2378_v21  ;;  %v599_v57 = vsub.f32 %v561_v53, %v2602_v46  ;;  %v1087_v59 = vmul.f32 %v2626_v0, %v2712_v49  ;;  %v662_v32 = vld [vmem:[%s2509_s17 + $0x38] sm:$0xff] }
  0x9a   : > { %894 = vmatprep.mubr.f32.mxu0 %v2378_v21  ;;  %v1086_v61 = vmul.f32 %v2626_v0, %v2718_v52  ;;  %v2739_v62 = vmul.f32 %v2621_v63, %v597_v47  ;;  %v2746_v7 = vmul.f32 %v2621_v63, %v600_v56  ;;  %v601_v9 = vsub.f32 %v563_v1, %v2602_v46 }
  0x9b   : > { %1114 = vadd.xlane.f32.xlu1 %v1079_v16  ;;  %1110 = vadd.xlane.f32.xlu0 %v1077_v17  ;;  %v1089_v11 = vmul.f32 %v2626_v0, %v2726_v55  ;;  %v2759_v15 = vmul.f32 %v2621_v63, %v599_v57  ;;  %v565_v16 = vld [vmem:[%s2504_s6 + $0x90] sm:$0xff]  ;;  %v2766_v18 = vmul.f32 %v2621_v63, %v602_v8 }
  0x9c   : > { %1992 = vmatmul.mubr.msk.f32.gmra.mrb[4].mxu1 %vm715_vm0, %v673_v48  ;;  %v1088_v14 = vmul.f32 %v2626_v0, %v2739_v62  ;;  %v661_v17 = vld [vmem:[%s2509_s17 + $0x30] sm:$0xff]  ;;  %v604_v20 = vsub.f32 %v566_v13, %v2602_v46  ;;  %v603_v22 = vsub.f32 %v565_v16, %v2602_v46  ;;  %v1091_v26 = vmul.f32 %v2626_v0, %v2746_v7 }
  0x9d   : > { %1977 = vmatmul.mubr.msk.f32.gmra.mrb[6].mxu0 %vm715_vm0, %v658_v43  ;;  %990 = vmatprep.mubr.f32.mxu1 %v2378_v21  ;;  %v2779_v29 = vmul.f32 %v2621_v63, %v601_v9  ;;  %v605_v37 = vsub.f32 %v567_v31, %v2602_v46  ;;  %v1093_v39 = vmul.f32 %v2626_v0, %v2766_v18  ;;  %v574_v9 = vld [vmem:[%s2504_s6 + $0xd8] sm:$0xff]  ;;  %v573_v13 = vld [vmem:[%s2504_s6 + $0xd0] sm:$0xff]  ;;  %v575_v31 = vld [vmem:[%s2504_s6 + $0xe0] sm:$0xff] }
  0x9e   : > { %900 = vmatprep.mubr.f32.mxu0 %v2378_v21  ;;  %v2786_v34 = vmul.f32 %v2621_v63, %v604_v20  ;;  %v2799_v43 = vmul.f32 %v2621_v63, %v603_v22  ;;  %v611_v20 = vsub.f32 %v573_v13, %v2602_v46  ;;  %v680_v22 = vld [vmem:[%s2509_s17 + $0xc8] sm:$0xff] }
  0x9f   : > { %1118 = vadd.xlane.f32.xlu1 %v1081_v27  ;;  %1116 = vadd.xlane.f32.xlu0 %v1080_v28  ;;  %v568_v27 = vld [vmem:[%s2504_s6 + $0xa8] sm:$0xff]  ;;  %v1090_v28 = vmul.f32 %v2626_v0, %v2759_v15  ;;  %3439 = vst [vmem:[#allocation12_spill] sm:$0xff] %v2779_v29  ;;  %v1092_v42 = vmul.f32 %v2626_v0, %v2779_v29 }
  0xa0   : > { %1993 = vmatmul.mubr.msk.f32.gmra.mrb[6].mxu1 %vm715_vm0, %v674_v58  ;;  %v606_v36 = vsub.f32 %v568_v27, %v2602_v46  ;;  %3440 = vst [vmem:[#allocation13_spill] sm:$0xff] %v2799_v43  ;;  %v1095_v47 = vmul.f32 %v2626_v0, %v2786_v34  ;;  %v1094_v56 = vmul.f32 %v2626_v0, %v2799_v43  ;;  %v571_v58 = vld [vmem:[%s2504_s6 + $0xc0] sm:$0xff] }
  0xa1   : > { %1978 = vmatmul.mubr.msk.f32.gmra.mrb[8].mxu0 %vm715_vm0, %v659_v54  ;;  %996 = vmatprep.mubr.f32.mxu1 %v2378_v21  ;;  %v572_v54 = vld [vmem:[%s2504_s6 + $0xc8] sm:$0xff]  ;;  %v2819_v57 = vmul.f32 %v2621_v63, %v605_v37  ;;  %v609_v1 = vsub.f32 %v571_v58, %v2602_v46  ;;  %v682_v58 = vld [vmem:[%s2509_s17 + $0xd8] sm:$0xff] }
  0xa2   : > { %906 = vmatprep.mubr.f32.mxu0 %v2378_v21  ;;  %v2813_v53 = vmul.f32 %v2621_v63, %v606_v36  ;;  %v2379_v36 = vmov 0  }
  0xa3   : > { %1122 = vadd.xlane.f32.xlu1 %v1083_v38  ;;  %1120 = vadd.xlane.f32.xlu0 %v1082_v40  ;;  %v677_v38 = vld [vmem:[%s2509_s17 + $0xb0] sm:$0xff]  ;;  %v570_v40 = vld [vmem:[%s2504_s6 + $0xb8] sm:$0xff]  ;;  %3441 = vst [vmem:[#allocation14_spill] sm:$0xff] %v2819_v57 }
  0xa4   : > { %1994 = vmatmul.mubr.msk.f32.gmra.mrb[8].mxu1 %vm715_vm0, %v675_v10  ;;  %v608_v48 = vsub.f32 %v570_v40, %v2602_v46  ;;  %v1097_v8 = vmul.f32 %v2626_v0, %v2813_v53  ;;  %v1096_v10 = vmul.f32 %v2626_v0, %v2819_v57  ;;  %2149 = vset.pattern.permute.xlu0 %v2379_v36  ;;  %v681_v40 = vld [vmem:[%s2509_s17 + $0xd0] sm:$0xff] }
  0xa5   : > { %1979 = vmatmul.mubr.msk.f32.gmra.mrb[10].mxu0 %vm715_vm0, %v660_v2  ;;  %1002 = vmatprep.mubr.f32.mxu1 %v2378_v21  ;;  %v679_v2 = vld [vmem:[%s2509_s17 + $0xc0] sm:$0xff] }
  0xa6   : > { %912 = vmatprep.mubr.f32.mxu0 %v2378_v21  ;;  %v2826_v60 = vmul.f32 %v2621_v63, %v608_v48  ;;  %v577_v48 = vld [vmem:[%s2504_s6 + $0xf0] sm:$0xff]  ;;  %2150 = vset.pattern.permute.xlu1 %v2379_v36 }
  0xa7   : > { %1126 = vadd.xlane.f32.xlu1 %v1085_v44  ;;  %1124 = vadd.xlane.f32.xlu0 %v1084_v51  ;;  %v569_v44 = vld [vmem:[%s2504_s6 + $0xb0] sm:$0xff]  ;;  %v678_v51 = vld [vmem:[%s2509_s17 + $0xb8] sm:$0xff] }
  0xa8   : > { %1995 = vmatmul.mubr.msk.f32.gmra.mrb[10].mxu1 %vm715_vm0, %v676_v25  ;;  %v607_v50 = vsub.f32 %v569_v44, %v2602_v46  ;;  %v1099_v25 = vmul.f32 %v2626_v0, %v2826_v60  ;;  %v578_v44 = vld [vmem:[%s2504_s6 + $0xf8] sm:$0xff] }
  0xa9   : > { %1980 = vmatmul.mubr.msk.f32.gmra.mrb[12].mxu0 %vm715_vm0, %v661_v17  ;;  %1008 = vmatprep.mubr.f32.mxu1 %v2378_v21  ;;  %v612_v17 = vsub.f32 %v574_v9, %v2602_v46 }
  0xaa   : > { %918 = vmatprep.mubr.f32.mxu0 %v2378_v21 }
  0xab   : > { %1130 = vadd.xlane.f32.xlu1 %v1087_v59  ;;  %1128 = vadd.xlane.f32.xlu0 %v1086_v61  ;;  %v664_v59 = vld [vmem:[%s2509_s17 + $0x48] sm:$0xff]  ;;  %v610_v61 = vsub.f32 %v572_v54, %v2602_v46  ;;  %v2866_v37 = vmul.f32 %v2621_v63, %v612_v17  ;;  %v616_v54 = vsub.f32 %v578_v44, %v2602_v46 }
  0xac   : > { %1996 = vmatmul.mubr.msk.f32.gmra.mrb[12].mxu1 %vm715_vm0, %v677_v38  ;;  %v684_v17 = vld [vmem:[%s2509_s17 + $0xe8] sm:$0xff] }
  0xad   : > { %1981 = vmatmul.mubr.msk.f32.gmra.mrb[14].mxu0 %vm715_vm0, %v662_v32  ;;  %1014 = vmatprep.mubr.f32.mxu1 %v2378_v21  ;;  %v2846_v16 = vmul.f32 %v2621_v63, %v610_v61  ;;  %v666_v32 = vld [vmem:[%s2509_s17 + $0x58] sm:$0xff]  ;;  %3444 = vst [vmem:[#allocation17_spill] sm:$0xff] %v2866_v37 }
  0xae   : > { %924 = vmatprep.mubr.f32.mxu0 %v2378_v21 }
  0xaf   : > { %1134 = vadd.xlane.f32.xlu1 %v1089_v11  ;;  %1132 = vadd.xlane.f32.xlu0 %v1088_v14  ;;  %v2839_v11 = vmul.f32 %v2621_v63, %v607_v50  ;;  %v665_v14 = vld [vmem:[%s2509_s17 + $0x50] sm:$0xff]  ;;  %v667_v50 = vld [vmem:[%s2509_s17 + $0x60] sm:$0xff] }
  0xb0   : > { %1997 = vmatmul.mubr.msk.f32.gmra.mrb[14].mxu1 %vm715_vm0, %v678_v51  ;;  %v1103_v51 = vmul.f32 %v2626_v0, %v2866_v37 }
  0xb1   : > { %1982 = vmatmul.mubr.msk.f32.gmra.mrb[16].mxu0 %vm715_vm0, %v663_v45  ;;  %1020 = vmatprep.mubr.f32.mxu1 %v2378_v21  ;;  %3442 = vst [vmem:[#allocation15_spill] sm:$0xff] %v2839_v11  ;;  %v1098_v27 = vmul.f32 %v2626_v0, %v2839_v11 }
  0xb2   : > { %930 = vmatprep.mubr.f32.mxu0 %v2378_v21 }
  0xb3   : > { %1138 = vadd.xlane.f32.xlu1 %v1091_v26  ;;  %1136 = vadd.xlane.f32.xlu0 %v1090_v28  ;;  %v576_v26 = vld [vmem:[%s2504_s6 + $0xe8] sm:$0xff]  ;;  %v2859_v28 = vmul.f32 %v2621_v63, %v609_v1 }
  0xb4   : > { %1998 = vmatmul.mubr.msk.f32.gmra.mrb[16].mxu1 %vm715_vm0, %v679_v2  ;;  %v614_v38 = vsub.f32 %v576_v26, %v2602_v46  ;;  %v668_v2 = vld [vmem:[%s2509_s17 + $0x68] sm:$0xff]  ;;  %v686_v26 = vld [vmem:[%s2509_s17 + $0xf8] sm:$0xff] }
  0xb5   : > { %1983 = vmatmul.mubr.msk.f32.gmra.mrb[18].mxu0 %vm715_vm0, %v664_v59  ;;  %1026 = vmatprep.mubr.f32.mxu1 %v2378_v21  ;;  %3443 = vst [vmem:[#allocation16_spill] sm:$0xff] %v2859_v28  ;;  %v1100_v45 = vmul.f32 %v2626_v0, %v2859_v28 }
  0xb6   : > { %936 = vmatprep.mubr.f32.mxu0 %v2378_v21  ;;  %v2893_v59 = vmul.f32 %v2621_v63, %v614_v38 }
  0xb7   : > { %1142 = vadd.xlane.f32.xlu1 %v1093_v39  ;;  %1140 = vadd.xlane.f32.xlu0 %v1092_v42  ;;  %v613_v39 = vsub.f32 %v575_v31, %v2602_v46  ;;  %v1101_v42 = vmul.f32 %v2626_v0, %v2846_v16 }
  0xb8   : > { %1999 = vmatmul.mubr.msk.f32.gmra.mrb[18].mxu1 %vm715_vm0, %v680_v22  ;;  %v1105_v9 = vmul.f32 %v2626_v0, %v2893_v59  ;;  %v670_v22 = vld [vmem:[%s2509_s17 + $0x78] sm:$0xff] }
  0xb9   : > { %1984 = vmatmul.mubr.msk.f32.gmra.mrb[20].mxu0 %vm715_vm0, %v665_v14  ;;  %1032 = vmatprep.mubr.f32.mxu1 %v2378_v21  ;;  %v2898_v1 = vmul.f32 %v2621_v63, %v613_v39  ;;  %v669_v14 = vld [vmem:[%s2509_s17 + $0x70] sm:$0xff] }
  0xba   : > { %942 = vmatprep.mubr.f32.mxu0 %v2378_v21 }
  0xbb   : > { %1146 = vadd.xlane.f32.xlu1 %v1095_v47  ;;  %1144 = vadd.xlane.f32.xlu0 %v1094_v56  ;;  %v2879_v47 = vmul.f32 %v2621_v63, %v611_v20  ;;  %v615_v56 = vsub.f32 %v577_v48, %v2602_v46  ;;  %3446 = vst [vmem:[#allocation19_spill] sm:$0xff] %v2898_v1 }
  0xbc   : > { %2000 = vmatmul.mubr.msk.f32.gmra.mrb[20].mxu1 %vm715_vm0, %v681_v40  ;;  %v2904_v46 = vmul.f32 %v2621_v63, %v616_v54 }
  0xbd   : > { %1985 = vmatmul.mubr.msk.f32.gmra.mrb[22].mxu0 %vm715_vm0, %v666_v32  ;;  %3445 = vst [vmem:[#allocation18_spill] sm:$0xff] %v2879_v47  ;;  %1038 = vmatprep.mubr.f32.mxu1 %v2378_v21  ;;  %v1102_v61 = vmul.f32 %v2626_v0, %v2879_v47  ;;  %v2914_v13 = vmul.f32 %v2621_v63, %v615_v56 }
  0xbe   : > { %948 = vmatprep.mubr.f32.mxu0 %v2378_v21  ;;  %v1107_v20 = vmul.f32 %v2626_v0, %v2904_v46 }
  0xbf   : > { %1150 = vadd.xlane.f32.xlu1 %v1097_v8  ;;  %1148 = vadd.xlane.f32.xlu0 %v1096_v10  ;;  %v683_v8 = vld [vmem:[%s2509_s17 + $0xe0] sm:$0xff]  ;;  %v1104_v10 = vmul.f32 %v2626_v0, %v2898_v1  ;;  %v1106_v63 = vmul.f32 %v2626_v0, %v2914_v13 }
  0xc0   : > { %2001 = vmatmul.mubr.msk.f32.gmra.mrb[22].mxu1 %vm715_vm0, %v682_v58  ;;  %v2936_v0 = vld [vmem:[#allocation5] ss:$0 sm:$0xff] }
  0xc1   : > { %1986 = vmatmul.mubr.msk.f32.gmra.mrb[24].mxu0 %vm715_vm0, %v667_v50  ;;  %1044 = vmatprep.mubr.f32.mxu1 %v2378_v21 }
  0xc2   : > { %954 = vmatprep.mubr.f32.mxu0 %v2378_v21 }
  0xc3   : > { %1154 = vadd.xlane.f32.xlu1 %v1099_v25  ;;  %1152 = vadd.xlane.f32.xlu0 %v1098_v27  ;;  %v685_v25 = vld [vmem:[%s2509_s17 + $0xf0] sm:$0xff] }
  0xc4   : > { %2002 = vmatmul.mubr.msk.f32.gmra.mrb[24].mxu1 %vm715_vm0, %v683_v8 }
  0xc5   : > { %1987 = vmatmul.mubr.msk.f32.gmra.mrb[26].mxu0 %vm715_vm0, %v668_v2  ;;  %1050 = vmatprep.mubr.f32.mxu1 %v2378_v21 }
  0xc6   : > { %960 = vmatprep.mubr.f32.mxu0 %v2378_v21 }
  0xc7   : > { %1158 = vadd.xlane.f32.xlu1 %v1101_v42  ;;  %1156 = vadd.xlane.f32.xlu0 %v1100_v45 }
  0xc8   : > { %2003 = vmatmul.mubr.msk.f32.gmra.mrb[26].mxu1 %vm715_vm0, %v684_v17 }
  0xc9   : > { %1988 = vmatmul.mubr.msk.f32.gmra.mrb[28].mxu0 %vm715_vm0, %v669_v14  ;;  %1056 = vmatprep.mubr.f32.mxu1 %v2378_v21 }
  0xca   : > { %966 = vmatprep.mubr.f32.mxu0 %v2378_v21 }
  0xcb   : > { %1162 = vadd.xlane.f32.xlu1 %v1103_v51  ;;  %1160 = vadd.xlane.f32.xlu0 %v1102_v61 }
  0xcc   : > { %2004 = vmatmul.mubr.msk.f32.gmra.mrb[28].mxu1 %vm715_vm0, %v685_v25 }
  0xcd   : > { %1989 = vmatmul.mubr.msk.f32.gmra.mrb[30].mxu0 %vm715_vm0, %v670_v22  ;;  %1062 = vmatprep.mubr.f32.mxu1 %v2378_v21 }
  0xcf   : > { %1166 = vadd.xlane.f32.xlu1 %v1105_v9  ;;  %1164 = vadd.xlane.f32.xlu0 %v1104_v10 }
  0xd0   : > { %2005 = vmatmul.mubr.msk.f32.gmra.mrb[30].mxu1 %vm715_vm0, %v686_v26 }
  0xd3   : > { %1170 = vadd.xlane.f32.xlu1 %v1107_v20  ;;  %1168 = vadd.xlane.f32.xlu0 %v1106_v63 }
 0x124   : > { %v1113_v27 = vpop.xlane.xlu1 %1112  ;;  %v1109_v31 = vpop.xlane.xlu0 %1108 }
 0x125   : > { %v1181_v32 = vadd.f32 %v2936_v0, %v1113_v27  ;;  %v1179_v36 = vadd.f32 %v2936_v0, %v1109_v31 }
 0x127   : > { %v2010_v38 = vmul.f32 -1.442695, %v1181_v32  ;;  %v2008_v39 = vmul.f32 -1.442695, %v1179_v36 }
 0x128   : > { %v1115_v40 = vpop.xlane.xlu1 %1114  ;;  %v1111_v42 = vpop.xlane.xlu0 %1110 }
 0x129   : > { %v1182_v44 = vadd.f32 %v2936_v0, %v1115_v40  ;;  %v1180_v45 = vadd.f32 %v2936_v0, %v1111_v42  ;;  %2153 = vpow2.f32 %v2008_v39 }
 0x12a   : > { %2155 = vpow2.f32 %v2010_v38 }
 0x12b   : > { %v2011_v21 = vmul.f32 -1.442695, %v1182_v44  ;;  %v2009_v48 = vmul.f32 -1.442695, %v1180_v45 }
 0x12c   : > { %v1119_v50 = vpop.xlane.xlu1 %1118  ;;  %v1117_v51 = vpop.xlane.xlu0 %1116 }
 0x12d   : > { %v1184_v54 = vadd.f32 %v2936_v0, %v1119_v50  ;;  %v1183_v56 = vadd.f32 %v2936_v0, %v1117_v51  ;;  %2157 = vpow2.f32 %v2009_v48 }
 0x12e   : > { %2159 = vpow2.f32 %v2011_v21 }
 0x12f   : > { %v2013_v58 = vmul.f32 -1.442695, %v1184_v54  ;;  %v2012_v61 = vmul.f32 -1.442695, %v1183_v56 }
 0x130   : > { %v1123_v2 = vpop.xlane.xlu1 %1122  ;;  %v1121_v8 = vpop.xlane.xlu0 %1120 }
 0x131   : > { %2161 = vpow2.f32 %v2013_v58  ;;  %v1185_v9 = vadd.f32 %v2936_v0, %v1121_v8  ;;  %v1186_v26 = vadd.f32 %v2936_v0, %v1123_v2 }
 0x132   : > { %2163 = vpow2.f32 %v2012_v61 }
 0x133   : > { %v2154_v10 = vpop.eup %2153  ;;  %v2014_v25 = vmul.f32 -1.442695, %v1185_v9  ;;  %v2015_v45 = vmul.f32 -1.442695, %v1186_v26 }
 0x134   : > { %v1127_v14 = vpop.xlane.xlu1 %1126  ;;  %v1125_v17 = vpop.xlane.xlu0 %1124  ;;  %v1307_v63 = vadd.f32 1.0, %v2154_v10 }
 0x135   : > { %v2156_v20 = vpop.eup %2155  ;;  %v1188_v22 = vadd.f32 %v2936_v0, %v1127_v14  ;;  %v1187_v44 = vadd.f32 %v2936_v0, %v1125_v17 }
 0x136   : > { %2165 = vrcp.f32 %v1307_v63  ;;  %v1309_v32 = vadd.f32 1.0, %v2156_v20 }
 0x137   : > { %v2017_v27 = vmul.f32 -1.442695, %v1188_v22  ;;  %v2158_v31 = vpop.eup %2157  ;;  %v2016_v2 = vmul.f32 -1.442695, %v1187_v44 }
 0x138   : > { %v1131_v36 = vpop.xlane.xlu1 %1130  ;;  %v1129_v38 = vpop.xlane.xlu0 %1128  ;;  %v1308_v40 = vadd.f32 1.0, %v2158_v31 }
 0x139   : > { %v2160_v39 = vpop.eup %2159  ;;  %2167 = vpow2.f32 %v2017_v27  ;;  %v1190_v42 = vadd.f32 %v2936_v0, %v1131_v36  ;;  %v1189_v61 = vadd.f32 %v2936_v0, %v1129_v38 }
 0x13a   : > { %2169 = vpow2.f32 %v2014_v25  ;;  %v1310_v50 = vadd.f32 1.0, %v2160_v39 }
 0x13b   : > { %2171 = vrcp.f32 %v1308_v40  ;;  %v2019_v21 = vmul.f32 -1.442695, %v1190_v42  ;;  %v2162_v48 = vpop.eup %2161  ;;  %v2018_v25 = vmul.f32 -1.442695, %v1189_v61 }
 0x13c   : > { %2173 = vrcp.f32 %v1309_v32  ;;  %v1135_v51 = vpop.xlane.xlu1 %1134  ;;  %v1133_v54 = vpop.xlane.xlu0 %1132  ;;  %v1312_v8 = vadd.f32 1.0, %v2162_v48 }
 0x13d   : > { %v2164_v56 = vpop.eup %2163  ;;  %2175 = vpow2.f32 %v2019_v21  ;;  %v1192_v58 = vadd.f32 %v2936_v0, %v1135_v51  ;;  %v1191_v17 = vadd.f32 %v2936_v0, %v1133_v54 }
 0x13e   : > { %2177 = vpow2.f32 %v2015_v45  ;;  %v1311_v10 = vadd.f32 1.0, %v2164_v56 }
 0x13f   : > { %v2021_v9 = vmul.f32 -1.442695, %v1192_v58  ;;  %2179 = vrcp.f32 %v1310_v50  ;;  %v2020_v38 = vmul.f32 -1.442695, %v1191_v17 }
 0x140   : > { %v1139_v14 = vpop.xlane.xlu1 %1138  ;;  %v1137_v20 = vpop.xlane.xlu0 %1136 }
 0x141   : > { %v2166_v63 = vpop.eup %2165  ;;  %2181 = vpow2.f32 %v2021_v9  ;;  %v1194_v22 = vadd.f32 %v2936_v0, %v1139_v14  ;;  %v1193_v39 = vadd.f32 %v2936_v0, %v1137_v20 }
 0x142   : > { %1574 = vperm.xlu0 %2149, %v2166_v63   ;;  %2183 = vpow2.f32 %v2016_v2 }
 0x143   : > { %v2168_v26 = vpop.eup %2167  ;;  %2185 = vrcp.f32 %v1312_v8  ;;  %v2023_v27 = vmul.f32 -1.442695, %v1194_v22  ;;  %v2022_v56 = vmul.f32 -1.442695, %v1193_v39 }
 0x144   : > { %v2170_v31 = vpop.eup %2169  ;;  %v1316_v32 = vadd.f32 1.0, %v2168_v26  ;;  %2187 = vrcp.f32 %v1311_v10  ;;  %v1143_v36 = vpop.xlane.xlu1 %1142 }
 0x145   : > { %v1141_v40 = vpop.xlane.xlu0 %1140  ;;  %v2172_v42 = vpop.eup %2171  ;;  %v1196_v44 = vadd.f32 %v2936_v0, %v1143_v36  ;;  %2189 = vpow2.f32 %v2018_v25  ;;  %v1313_v48 = vadd.f32 1.0, %v2170_v31 }
 0x146   : > { %v2174_v45 = vpop.eup %2173  ;;  %2191 = vrcp.f32 %v1316_v32  ;;  %1579 = vperm.xlu1 %2150, %v2172_v42   ;;  %v1195_v9 = vadd.f32 %v2936_v0, %v1141_v40 }
 0x147   : > { %v2176_v21 = vpop.eup %2175  ;;  %2193 = vpow2.f32 %v2023_v27  ;;  %v2025_v50 = vmul.f32 -1.442695, %v1196_v44 }
 0x148   : > { %v1318_v51 = vadd.f32 1.0, %v2176_v21  ;;  %v1147_v54 = vpop.xlane.xlu1 %1146  ;;  %2195 = vpow2.f32 %v2020_v38  ;;  %v2178_v61 = vpop.eup %2177  ;;  %v2024_v32 = vmul.f32 -1.442695, %v1195_v9 }
 0x149   : > { %v1145_v58 = vpop.xlane.xlu0 %1144  ;;  %2197 = vpow2.f32 %v2025_v50  ;;  %v1198_v2 = vadd.f32 %v2936_v0, %v1147_v54  ;;  %v2180_v8 = vpop.eup %2179  ;;  %v1314_v20 = vadd.f32 1.0, %v2178_v61 }
 0x14a   : > { %2199 = vrcp.f32 %v1318_v51  ;;  %1584 = vperm.xlu1 %2150, %v2174_v45   ;;  %v1197_v44 = vadd.f32 %v2936_v0, %v1145_v58 }
 0x14b   : > { %v2182_v10 = vpop.eup %2181  ;;  %2201 = vrcp.f32 %v1313_v48  ;;  %v2027_v14 = vmul.f32 -1.442695, %v1198_v2 }
 0x14c   : > { %v2184_v17 = vpop.eup %2183  ;;  %v1320_v63 = vadd.f32 1.0, %v2182_v10  ;;  %v1151_v22 = vpop.xlane.xlu1 %1150  ;;  %2203 = vpow2.f32 %v2022_v56  ;;  %v2026_v10 = vmul.f32 -1.442695, %v1197_v44 }
 0x14d   : > { %v1149_v25 = vpop.xlane.xlu0 %1148  ;;  %v2186_v26 = vpop.eup %2185  ;;  %2205 = vpow2.f32 %v2027_v14  ;;  %v1200_v27 = vadd.f32 %v2936_v0, %v1151_v22  ;;  %v1315_v38 = vadd.f32 1.0, %v2184_v17 }
 0x14e   : > { %v2188_v31 = vpop.eup %2187  ;;  %2207 = vrcp.f32 %v1320_v63  ;;  %1589 = vperm.xlu1 %2150, %v2180_v8   ;;  %v1199_v58 = vadd.f32 %v2936_v0, %v1149_v25 }
 0x14f   : > { %v2190_v36 = vpop.eup %2189  ;;  %v2029_v39 = vmul.f32 -1.442695, %v1200_v27  ;;  %2209 = vrcp.f32 %v1314_v20 }
 0x150   : > { %v2192_v40 = vpop.eup %2191  ;;  %v1155_v42 = vpop.xlane.xlu1 %1154  ;;  %v1317_v56 = vadd.f32 1.0, %v2190_v36 }
 0x151   : > { %v1153_v45 = vpop.xlane.xlu0 %1152  ;;  %v2194_v21 = vpop.eup %2193  ;;  %2211 = vpow2.f32 %v2029_v39  ;;  %v1202_v48 = vadd.f32 %v2936_v0, %v1155_v42  ;;  %1619 = vperm.xlu0 %2149, %v2192_v40   ;;  %v2028_v39 = vmul.f32 -1.442695, %v1199_v58 }
 0x152   : > { %v2196_v50 = vpop.eup %2195  ;;  %v1322_v51 = vadd.f32 1.0, %v2194_v21  ;;  %1594 = vperm.xlu1 %2150, %v2188_v31   ;;  %2213 = vpow2.f32 %v2024_v32  ;;  %v1201_v25 = vadd.f32 %v2936_v0, %v1153_v45 }
 0x153   : > { %v2198_v54 = vpop.eup %2197  ;;  %2215 = vrcp.f32 %v1315_v38  ;;  %v2031_v61 = vmul.f32 -1.442695, %v1202_v48  ;;  %v1319_v27 = vadd.f32 1.0, %v2196_v50 }
 0x154   : > { %v2200_v2 = vpop.eup %2199  ;;  %2217 = vrcp.f32 %v1322_v51  ;;  %v1324_v8 = vadd.f32 1.0, %v2198_v54  ;;  %v1159_v9 = vpop.xlane.xlu1 %1158 }
 0x155   : > { %v1157_v14 = vpop.xlane.xlu0 %1156  ;;  %v2202_v17 = vpop.eup %2201  ;;  %2219 = vpow2.f32 %v2031_v61  ;;  %v1204_v20 = vadd.f32 %v2936_v0, %v1159_v9  ;;  %1629 = vperm.xlu0 %2149, %v2200_v2  }
 0x156   : > { %v2204_v63 = vpop.eup %2203  ;;  %2221 = vrcp.f32 %v1324_v8  ;;  %1599 = vperm.xlu1 %2150, %v2186_v26   ;;  %v1203_v61 = vadd.f32 %v2936_v0, %v1157_v14 }
 0x157   : > { %v2206_v22 = vpop.eup %2205  ;;  %2223 = vrcp.f32 %v1317_v56  ;;  %v2033_v31 = vmul.f32 -1.442695, %v1204_v20  ;;  %v1321_v21 = vadd.f32 1.0, %v2204_v63  ;;  %v2030_v56 = vmul.f32 -1.442695, %v1201_v25 }
 0x158   : > { %v2208_v32 = vpop.eup %2207  ;;  %v1326_v36 = vadd.f32 1.0, %v2206_v22  ;;  %v1163_v38 = vpop.xlane.xlu1 %1162  ;;  %2225 = vpow2.f32 %v2026_v10  ;;  %v3415_v25 = vsub.s32 1, %v2554_v24 }
 0x159   : > { %2227 = vpow2.f32 %v2033_v31  ;;  %v1206_v40 = vadd.f32 %v2936_v0, %v1163_v38  ;;  %1639 = vperm.xlu0 %2149, %v2208_v32   ;;  %v1161_v42 = vpop.xlane.xlu0 %1160  ;;  %v2210_v44 = vpop.eup %2209 }
 0x15a   : > { %2229 = vrcp.f32 %v1326_v36  ;;  %1604 = vperm.xlu1 %2150, %v2202_v17   ;;  %v1205_v14 = vadd.f32 %v2936_v0, %v1161_v42  ;;  %v703_v42 = vld [vmem:[%s3408_s4] sm:$0x3] }
 0x15b   : > { %v2212_v26 = vpop.eup %2211  ;;  %2231 = vrcp.f32 %v1319_v27  ;;  %v2035_v48 = vmul.f32 -1.442695, %v1206_v40  ;;  %v2032_v27 = vmul.f32 -1.442695, %v1203_v61  ;;  %v2974_v61 = vrot.slane %v703_v42, %v2578_v35 }
 0x15c   : > { %v2214_v50 = vpop.eup %2213  ;;  %v1328_v51 = vadd.f32 1.0, %v2212_v26  ;;  %v1167_v54 = vpop.xlane.xlu1 %1166  ;;  %2233 = vpow2.f32 %v2028_v39  ;;  %v2034_v26 = vmul.f32 -1.442695, %v1205_v14 }
 0x15d   : > { %v2216_v45 = vpop.eup %2215  ;;  %2235 = vpow2.f32 %v2035_v48  ;;  %v1208_v2 = vadd.f32 %v2936_v0, %v1167_v54  ;;  %v1323_v10 = vadd.f32 1.0, %v2214_v50  ;;  %v1165_v17 = vpop.xlane.xlu0 %1164 }
 0x15e   : > { %v2218_v8 = vpop.eup %2217  ;;  %2237 = vrcp.f32 %v1328_v51  ;;  %1609 = vperm.xlu1 %2150, %v2210_v44  }
 0x15f   : > { %v2220_v9 = vpop.eup %2219  ;;  %2239 = vrcp.f32 %v1321_v21  ;;  %v2037_v58 = vmul.f32 -1.442695, %v1208_v2  ;;  %1649 = vperm.xlu0 %2149, %v2218_v8   ;;  %v1207_v21 = vadd.f32 %v2936_v0, %v1165_v17 }
 0x160   : > { %v2222_v20 = vpop.eup %2221  ;;  %v1330_v63 = vadd.f32 1.0, %v2220_v9  ;;  %v1171_v22 = vpop.xlane.xlu1 %1170  ;;  %2241 = vpow2.f32 %v2030_v56 }
 0x161   : > { %v2224_v31 = vpop.eup %2223  ;;  %2243 = vpow2.f32 %v2037_v58  ;;  %v1210_v32 = vadd.f32 %v2936_v0, %v1171_v22  ;;  %v1169_v51 = vpop.xlane.xlu0 %1168  ;;  %v2036_v9 = vmul.f32 -1.442695, %v1207_v21 }
 0x162   : > { %v2226_v36 = vpop.eup %2225  ;;  %2245 = vrcp.f32 %v1330_v63  ;;  %1614 = vperm.xlu1 %2150, %v2216_v45   ;;  %v2978_v45 = vrot.slane %v703_v42, %v3415_v25 }
 0x163   : > { %v2228_v38 = vpop.eup %2227  ;;  %2247 = vrcp.f32 %v1323_v10  ;;  %v2039_v39 = vmul.f32 -1.442695, %v1210_v32  ;;  %1659 = vperm.xlu0 %2149, %v2222_v20   ;;  %v1325_v50 = vadd.f32 1.0, %v2226_v36  ;;  %v1209_v10 = vadd.f32 %v2936_v0, %v1169_v51 }
 0x164   : > { %v2230_v40 = vpop.eup %2229  ;;  %v1332_v44 = vadd.f32 1.0, %v2228_v38  ;;  %2249 = vpow2.f32 %v2032_v27  ;;  %v878_v20 = vpop.f32.mrb[0].mxu0 }
 0x165   : > { %v2232_v48 = vpop.eup %2231  ;;  %2251 = vpow2.f32 %v2039_v39  ;;  %v880_v22 = vpop.f32.mrb[1].mxu0  ;;  %v879_v14 = vadd.f32 %v878_v20, %v2974_v61  ;;  %v2038_v38 = vmul.f32 -1.442695, %v1209_v10 }
 0x166   : > { %v2234_v54 = vpop.eup %2233  ;;  %2253 = vrcp.f32 %v1332_v44  ;;  %1624 = vperm.xlu1 %2150, %v2224_v31   ;;  %v881_v31 = vadd.f32 %v880_v22, %v2978_v45  ;;  %v974_v39 = vpop.f32.mrb[0].mxu1 }
 0x167   : > { %v2236_v56 = vpop.eup %2235  ;;  %1669 = vperm.xlu0 %2149, %v2230_v40   ;;  %2255 = vpow2.f32 %v2034_v26  ;;  %v1327_v17 = vadd.f32 1.0, %v2234_v54  ;;  %v976_v21 = vpop.f32.mrb[1].mxu1 }
 0x168   : > { %v2238_v2 = vpop.eup %2237  ;;  %v1334_v8 = vadd.f32 1.0, %v2236_v56  ;;  %2257 = vrcp.f32 %v1325_v50  ;;  %v1404_v44 = vmul.f32 %v881_v31, %v2634_v4  ;;  %v884_v26 = vpop.f32.mrb[2].mxu0  ;;  %v975_v50 = vadd.f32 %v974_v39, %v2974_v61 }
 0x169   : > { %v2240_v58 = vpop.eup %2239  ;;  %v977_v51 = vadd.f32 %v976_v21, %v2978_v45  ;;  %v885_v56 = vadd.f32 %v884_v26, %v2974_v61 }
 0x16a   : > { %v2242_v63 = vpop.eup %2241  ;;  %2259 = vrcp.f32 %v1334_v8  ;;  %1634 = vperm.xlu1 %2150, %v2232_v48   ;;  %v886_v48 = vpop.f32.mrb[3].mxu0  ;;  %v2988_v8 = vadd.f32 %v1404_v44, %v879_v14 }
 0x16b   : > { %v2244_v27 = vpop.eup %2243  ;;  %1679 = vperm.xlu0 %2149, %v2238_v2   ;;  %2261 = vpow2.f32 %v2036_v9  ;;  %v1329_v40 = vadd.f32 1.0, %v2242_v63  ;;  %v887_v2 = vadd.f32 %v886_v48, %v2978_v45 }
 0x16c   : > { %v2246_v32 = vpop.eup %2245  ;;  %v1336_v36 = vadd.f32 1.0, %v2244_v27  ;;  %2263 = vrcp.f32 %v1327_v17  ;;  %v1420_v17 = vmul.f32 %v977_v51, %v2779_v29  ;;  %v890_v63 = vpop.f32.mrb[4].mxu0 }
 0x16d   : > { %v2248_v0 = vpop.eup %2247  ;;  %v1405_v20 = vmul.f32 %v887_v2, %v2640_v6  ;;  %v892_v27 = vpop.f32.mrb[5].mxu0  ;;  %v891_v14 = vadd.f32 %v890_v63, %v2974_v61 }
 0x16e   : > { %v2250_v42 = vpop.eup %2249  ;;  %2265 = vrcp.f32 %v1336_v36  ;;  %1644 = vperm.xlu1 %2150, %v2240_v58   ;;  %v2992_v31 = vadd.f32 %v1420_v17, %v975_v50  ;;  %v893_v36 = vadd.f32 %v892_v27, %v2978_v45 }
 0x16f   : > { %v2252_v54 = vpop.eup %2251  ;;  %1689 = vperm.xlu0 %2149, %v2246_v32   ;;  %2267 = vpow2.f32 %v2038_v38  ;;  %v1331_v58 = vadd.f32 1.0, %v2250_v42  ;;  %v2996_v38 = vadd.f32 %v1405_v20, %v885_v56 }
 0x170   : > { %v2254_v9 = vpop.eup %2253  ;;  %v1338_v10 = vadd.f32 1.0, %v2252_v54  ;;  %2269 = vrcp.f32 %v1329_v40  ;;  %3447 = vst [vmem:[#allocation20_spill] sm:$0xff] %v2992_v31  ;;  %v980_v40 = vpop.f32.mrb[2].mxu1  ;;  %v1406_v26 = vmul.f32 %v893_v36, %v2631_v3 }
 0x171   : > { %v2256_v22 = vpop.eup %2255  ;;  %v896_v21 = vpop.f32.mrb[6].mxu0  ;;  %v981_v50 = vadd.f32 %v980_v40, %v2974_v61 }
 0x172   : > { %2271 = vrcp.f32 %v1338_v10  ;;  %1654 = vperm.xlu1 %2150, %v2248_v0   ;;  %v2258_v32 = vpop.eup %2257  ;;  %v1333_v44 = vadd.f32 1.0, %v2256_v22  ;;  %v982_v42 = vpop.f32.mrb[3].mxu1  ;;  %v897_v56 = vadd.f32 %v896_v21, %v2974_v61 }
 0x173   : > { %1699 = vperm.xlu0 %2149, %v2254_v9   ;;  %2273 = vrcp.f32 %v1331_v58  ;;  %v898_v48 = vpop.f32.mrb[7].mxu0  ;;  %v983_v51 = vadd.f32 %v982_v42, %v2978_v45  ;;  %v3003_v9 = vadd.f32 %v1406_v26, %v891_v14  ;;  %v986_v58 = vpop.f32.mrb[4].mxu1 }
 0x174   : > { %v2260_v39 = vpop.eup %2259  ;;  %v899_v2 = vadd.f32 %v898_v48, %v2978_v45  ;;  %2275 = vrcp.f32 %v1333_v44  ;;  %v902_v22 = vpop.f32.mrb[8].mxu0 }
 0x175   : > { %v2262_v0 = vpop.eup %2261  ;;  %v1421_v17 = vmul.f32 %v983_v51, %v2766_v18  ;;  %v988_v27 = vpop.f32.mrb[5].mxu1  ;;  %v903_v26 = vadd.f32 %v902_v22, %v2974_v61 }
 0x176   : > { %1664 = vperm.xlu1 %2150, %v2258_v32   ;;  %v2264_v54 = vpop.eup %2263  ;;  %v1335_v20 = vadd.f32 1.0, %v2262_v0  ;;  %v1407_v63 = vmul.f32 %v899_v2, %v2637_v5  ;;  %v904_v36 = vpop.f32.mrb[9].mxu0  ;;  %v989_v40 = vadd.f32 %v988_v27, %v2978_v45 }
 0x177   : > { %1709 = vperm.xlu0 %2149, %v2260_v39   ;;  %v987_v39 = vadd.f32 %v986_v58, %v2974_v61  ;;  %v3009_v21 = vadd.f32 %v1421_v17, %v981_v50  ;;  %v905_v44 = vadd.f32 %v904_v36, %v2978_v45  ;;  %v992_v51 = vpop.f32.mrb[6].mxu1 }
 0x178   : > { %v2266_v10 = vpop.eup %2265  ;;  %v3013_v42 = vadd.f32 %v1407_v63, %v897_v56  ;;  %v1422_v48 = vmul.f32 %v989_v40, %v2799_v43  ;;  %2277 = vrcp.f32 %v1335_v20  ;;  %v908_v58 = vpop.f32.mrb[10].mxu0 }
 0x179   : > { %v2268_v32 = vpop.eup %2267  ;;  %v1408_v2 = vmul.f32 %v905_v44, %v2662_v19  ;;  %v994_v27 = vpop.f32.mrb[7].mxu1  ;;  %v909_v63 = vadd.f32 %v908_v58, %v2974_v61 }
 0x17a   : > { %1674 = vperm.xlu1 %2150, %v2264_v54   ;;  %v2270_v14 = vpop.eup %2269  ;;  %v1337_v54 = vadd.f32 1.0, %v2268_v32  ;;  %v910_v50 = vpop.f32.mrb[11].mxu0  ;;  %v995_v17 = vadd.f32 %v994_v27, %v2978_v45  ;;  %v3019_v22 = vadd.f32 %v1422_v48, %v987_v39 }
 0x17b   : > { %1719 = vperm.xlu0 %2149, %v2266_v10   ;;  %v993_v10 = vadd.f32 %v992_v51, %v2974_v61  ;;  %v911_v36 = vadd.f32 %v910_v50, %v2978_v45  ;;  %v3023_v20 = vadd.f32 %v1408_v2, %v903_v26  ;;  %v998_v40 = vpop.f32.mrb[8].mxu1 }
 0x17c   : > { %v2272_v0 = vpop.eup %2271  ;;  %3448 = vst [vmem:[#allocation21_spill] sm:$0xff] %v3019_v22  ;;  %v1423_v32 = vmul.f32 %v995_v17, %v2786_v34  ;;  %2279 = vrcp.f32 %v1337_v54  ;;  %v914_v44 = vpop.f32.mrb[12].mxu0  ;;  %v999_v39 = vadd.f32 %v998_v40, %v2974_v61 }
 0x17d   : > { %v2274_v56 = vpop.eup %2273  ;;  %v1000_v51 = vpop.f32.mrb[9].mxu1  ;;  %v915_v26 = vadd.f32 %v914_v44, %v2974_v61 }
 0x17e   : > { %1684 = vperm.xlu1 %2150, %v2270_v14   ;;  %v1409_v14 = vmul.f32 %v911_v36, %v2650_v12  ;;  %v916_v27 = vpop.f32.mrb[13].mxu0  ;;  %v3029_v48 = vadd.f32 %v1423_v32, %v993_v10  ;;  %v2276_v58 = vpop.eup %2275 }
 0x17f   : > { %1729 = vperm.xlu0 %2149, %v2272_v0   ;;  %v1001_v0 = vadd.f32 %v1000_v51, %v2978_v45  ;;  %v917_v2 = vadd.f32 %v916_v27, %v2978_v45  ;;  %v1004_v17 = vpop.f32.mrb[10].mxu1 }
 0x180   : > { %v3033_v50 = vadd.f32 %v1409_v14, %v909_v63  ;;  %v1006_v25 = vpop.f32.mrb[11].mxu1  ;;  %v1005_v51 = vadd.f32 %v1004_v17, %v2974_v61 }
 0x181   : > { %v1424_v54 = vmul.f32 %v1001_v0, %v2819_v57  ;;  %v1410_v36 = vmul.f32 %v917_v2, %v2680_v30  ;;  %v1007_v10 = vadd.f32 %v1006_v25, %v2978_v45  ;;  %v1010_v2 = vpop.f32.mrb[12].mxu1 }
 0x182   : > { %1694 = vperm.xlu1 %2150, %v2274_v56   ;;  %v920_v56 = vpop.f32.mrb[14].mxu0  ;;  %v2278_v44 = vpop.eup %2277  ;;  %v1011_v25 = vadd.f32 %v1010_v2, %v2974_v61 }
 0x183   : > { %v922_v40 = vpop.f32.mrb[15].mxu0  ;;  %v3039_v32 = vadd.f32 %v1424_v54, %v999_v39  ;;  %v921_v27 = vadd.f32 %v920_v56, %v2974_v61  ;;  %v3043_v14 = vadd.f32 %v1410_v36, %v915_v26  ;;  %v1425_v0 = vmul.f32 %v1007_v10, %v2813_v53  ;;  %v1012_v57 = vpop.f32.mrb[13].mxu1 }
 0x184   : > { %v923_v63 = vadd.f32 %v922_v40, %v2978_v45  ;;  %v1013_v39 = vadd.f32 %v1012_v57, %v2978_v45 }
 0x185   : > { %3449 = vst [vmem:[#allocation22_spill] sm:$0xff] %v3039_v32  ;;  %v3049_v54 = vadd.f32 %v1425_v0, %v1005_v51 }
 0x186   : > { %1704 = vperm.xlu1 %2150, %v2276_v58   ;;  %v1411_v22 = vmul.f32 %v923_v63, %v2669_v23  ;;  %v926_v58 = vpop.f32.mrb[16].mxu0  ;;  %v2280_v56 = vpop.eup %2279  ;;  %v1426_v10 = vmul.f32 %v1013_v39, %v2839_v11 }
 0x187   : > { %v928_v17 = vpop.f32.mrb[17].mxu0  ;;  %3450 = vst [vmem:[#allocation23_spill] sm:$0xff] %v3049_v54  ;;  %v927_v40 = vadd.f32 %v926_v58, %v2974_v61  ;;  %v1016_v63 = vpop.f32.mrb[14].mxu1 }
 0x188   : > { %v929_v26 = vadd.f32 %v928_v17, %v2978_v45  ;;  %v3053_v36 = vadd.f32 %v1411_v22, %v921_v27  ;;  %v1018_v31 = vpop.f32.mrb[15].mxu1  ;;  %v1017_v57 = vadd.f32 %v1016_v63, %v2974_v61  ;;  %v3059_v0 = vadd.f32 %v1426_v10, %v1011_v25 }
 0x189   : > { %v1019_v51 = vadd.f32 %v1018_v31, %v2978_v45  ;;  %v1022_v39 = vpop.f32.mrb[16].mxu1 }
 0x18a   : > { %1714 = vperm.xlu1 %2150, %v2278_v44   ;;  %v1412_v32 = vmul.f32 %v929_v26, %v2699_v41  ;;  %v932_v44 = vpop.f32.mrb[18].mxu0  ;;  %3451 = vst [vmem:[#allocation24_spill] sm:$0xff] %v3059_v0  ;;  %v1023_v63 = vadd.f32 %v1022_v39, %v2974_v61 }
 0x18b   : > { %v934_v2 = vpop.f32.mrb[19].mxu0  ;;  %v933_v58 = vadd.f32 %v932_v44, %v2974_v61  ;;  %v1427_v17 = vmul.f32 %v1019_v51, %v2826_v60 }
 0x18c   : > { %v935_v22 = vadd.f32 %v934_v2, %v2978_v45  ;;  %v3063_v27 = vadd.f32 %v1412_v32, %v927_v40  ;;  %v938_v11 = vpop.f32.mrb[20].mxu0 }
 0x18d   : > { %v940_v43 = vpop.f32.mrb[21].mxu0  ;;  %v3069_v25 = vadd.f32 %v1427_v17, %v1017_v57  ;;  %v939_v10 = vadd.f32 %v938_v11, %v2974_v61 }
 0x18e   : > { %1724 = vperm.xlu1 %2150, %v2280_v56   ;;  %v1413_v26 = vmul.f32 %v935_v22, %v2687_v33  ;;  %v1024_v56 = vpop.f32.mrb[17].mxu1  ;;  %v941_v44 = vadd.f32 %v940_v43, %v2978_v45 }
 0x18f   : > { %v1025_v31 = vadd.f32 %v1024_v56, %v2978_v45  ;;  %3452 = vst [vmem:[#allocation25_spill] sm:$0xff] %v3069_v25  ;;  %v1028_v2 = vpop.f32.mrb[18].mxu1 }
 0x190   : > { %v3073_v32 = vadd.f32 %v1413_v26, %v933_v58  ;;  %v1414_v51 = vmul.f32 %v941_v44, %v2718_v52  ;;  %v944_v22 = vpop.f32.mrb[22].mxu0  ;;  %v1030_v0 = vpop.f32.mrb[19].mxu1  ;;  %v1029_v39 = vadd.f32 %v1028_v2, %v2974_v61 }
 0x191   : > { %v1428_v40 = vmul.f32 %v1025_v31, %v2859_v28  ;;  %v946_v54 = vpop.f32.mrb[23].mxu0  ;;  %v1031_v56 = vadd.f32 %v1030_v0, %v2978_v45  ;;  %v945_v11 = vadd.f32 %v944_v22, %v2974_v61  ;;  %v1034_v26 = vpop.f32.mrb[20].mxu1 }
 0x192   : > { %v947_v43 = vadd.f32 %v946_v54, %v2978_v45  ;;  %v3083_v58 = vadd.f32 %v1414_v51, %v939_v10  ;;  %v1036_v28 = vpop.f32.mrb[21].mxu1  ;;  %v1035_v2 = vadd.f32 %v1034_v26, %v2974_v61 }
 0x193   : > { %v3079_v57 = vadd.f32 %v1428_v40, %v1023_v63  ;;  %v1429_v17 = vmul.f32 %v1031_v56, %v2846_v16  ;;  %v1037_v0 = vadd.f32 %v1036_v28, %v2978_v45  ;;  %v1040_v22 = vpop.f32.mrb[22].mxu1 }
 0x194   : > { %v1415_v31 = vmul.f32 %v947_v43, %v2712_v49  ;;  %v950_v44 = vpop.f32.mrb[24].mxu0  ;;  %v1041_v26 = vadd.f32 %v1040_v22, %v2974_v61 }
 0x195   : > { %3453 = vst [vmem:[#allocation26_spill] sm:$0xff] %v3079_v57  ;;  %v952_v25 = vpop.f32.mrb[25].mxu0  ;;  %v3089_v63 = vadd.f32 %v1429_v17, %v1029_v39  ;;  %v951_v40 = vadd.f32 %v950_v44, %v2974_v61  ;;  %v1430_v51 = vmul.f32 %v1037_v0, %v2879_v47  ;;  %v1042_v57 = vpop.f32.mrb[23].mxu1 }
 0x196   : > { %v953_v54 = vadd.f32 %v952_v25, %v2978_v45  ;;  %v3093_v10 = vadd.f32 %v1415_v31, %v945_v11  ;;  %v1043_v28 = vadd.f32 %v1042_v57, %v2978_v45 }
 0x197   : > { %3454 = vst [vmem:[#allocation27_spill] sm:$0xff] %v3089_v63  ;;  %v3099_v39 = vadd.f32 %v1430_v51, %v1035_v2  ;;  %v1046_v44 = vpop.f32.mrb[24].mxu1 }
 0x198   : > { %v1416_v56 = vmul.f32 %v953_v54, %v2739_v62  ;;  %v956_v43 = vpop.f32.mrb[26].mxu0  ;;  %v1431_v31 = vmul.f32 %v1043_v28, %v2866_v37  ;;  %v1048_v47 = vpop.f32.mrb[25].mxu1  ;;  %v1047_v22 = vadd.f32 %v1046_v44, %v2974_v61 }
 0x199   : > { %v958_v29 = vpop.f32.mrb[27].mxu0  ;;  %3455 = vst [vmem:[#allocation28_spill] sm:$0xff] %v3099_v39  ;;  %v957_v17 = vadd.f32 %v956_v43, %v2974_v61  ;;  %v1049_v57 = vadd.f32 %v1048_v47, %v2978_v45 }
 0x19a   : > { %v959_v25 = vadd.f32 %v958_v29, %v2978_v45  ;;  %v3103_v11 = vadd.f32 %v1416_v56, %v951_v40  ;;  %v3109_v2 = vadd.f32 %v1431_v31, %v1041_v26 }
 0x19b   : > { %v1432_v56 = vmul.f32 %v1049_v57, %v2898_v1  ;;  %v1052_v43 = vpop.f32.mrb[26].mxu1 }
 0x19c   : > { %v1417_v0 = vmul.f32 %v959_v25, %v2726_v55  ;;  %v962_v54 = vpop.f32.mrb[28].mxu0  ;;  %v1054_v39 = vpop.f32.mrb[27].mxu1  ;;  %v1053_v44 = vadd.f32 %v1052_v43, %v2974_v61 }
 0x19d   : > { %v964_v63 = vpop.f32.mrb[29].mxu0  ;;  %v963_v51 = vadd.f32 %v962_v54, %v2974_v61  ;;  %v1055_v47 = vadd.f32 %v1054_v39, %v2978_v45  ;;  %v3119_v26 = vadd.f32 %v1432_v56, %v1047_v22 }
 0x19e   : > { %v965_v29 = vadd.f32 %v964_v63, %v2978_v45  ;;  %v3113_v40 = vadd.f32 %v1417_v0, %v957_v17 }
 0x19f   : > { %3456 = vst [vmem:[#allocation29_spill] sm:$0xff] %v3119_v26  ;;  %v1433_v0 = vmul.f32 %v1055_v47, %v2893_v59  ;;  %v1058_v54 = vpop.f32.mrb[28].mxu1 }
 0x1a0   : > { %v1418_v28 = vmul.f32 %v965_v29, %v2759_v15  ;;  %v968_v25 = vpop.f32.mrb[30].mxu0  ;;  %v1060_v29 = vpop.f32.mrb[29].mxu1  ;;  %v1059_v1 = vadd.f32 %v1058_v54, %v2974_v61  ;;  %v3457_v54 = vsub.s32 1, %v2554_v24 }
 0x1a1   : > { %v970_v37 = vpop.f32.mrb[31].mxu0  ;;  %v969_v31 = vadd.f32 %v968_v25, %v2974_v61  ;;  %v1061_v43 = vadd.f32 %v1060_v29, %v2978_v45  ;;  %v3129_v39 = vadd.f32 %v1433_v0, %v1053_v44 }
 0x1a2   : > { %v971_v63 = vadd.f32 %v970_v37, %v2978_v45  ;;  %v3123_v17 = vadd.f32 %v1418_v28, %v963_v51 }
 0x1a3   : > { %v1434_v56 = vmul.f32 %v1061_v43, %v2914_v13  ;;  %v1064_v37 = vpop.f32.mrb[30].mxu1 }
 0x1a4   : > { %v1419_v57 = vmul.f32 %v971_v63, %v2746_v7  ;;  %v1066_v25 = vpop.f32.mrb[31].mxu1  ;;  %v1065_v51 = vadd.f32 %v1064_v37, %v2974_v61  ;;  %v1403_v63 = vld [vmem:[%s2514_s9] sm:$0x3] }
 0x1a5   : > { %v1067_v28 = vadd.f32 %v1066_v25, %v2978_v45  ;;  %v3136_v47 = vadd.f32 %v1434_v56, %v1059_v1  ;;  %v3142_v29 = vrot.slane %v1403_v63, %v3457_v54  ;;  %v3149_v0 = vrot.slane %v1403_v63, %v2578_v35 }
 0x1a6   : > { %v3131_v22 = vadd.f32 %v1419_v57, %v969_v31 }
 0x1a7   : > { %v1435_v26 = vmul.f32 %v1067_v28, %v2904_v46  ;;  %v1472_v31 = vmul.f32 %v3142_v29, %v2634_v4  ;;  %v1473_v1 = vmul.f32 %v3142_v29, %v2640_v6  ;;  %v1475_v56 = vmul.f32 %v3142_v29, %v2637_v5 }
 0x1a8   : > { %v1481_v25 = vmul.f32 %v3142_v29, %v2687_v33  ;;  %v1476_v63 = vmul.f32 %v3142_v29, %v2662_v19 }
 0x1a9   : > { %v3144_v44 = vadd.f32 %v1435_v26, %v1065_v51  ;;  %v1508_v61 = vadd.f32 %v3149_v0, %v1472_v31  ;;  %v1509_v24 = vadd.f32 %v3149_v0, %v1473_v1  ;;  %v1474_v26 = vmul.f32 %v3142_v29, %v2631_v3 }
 0x1aa   : > { %v1511_v28 = vadd.f32 %v3149_v0, %v1475_v56  ;;  %v1517_v5 = vadd.f32 %v3149_v0, %v1481_v25  ;;  %v1512_v1 = vadd.f32 %v3149_v0, %v1476_v63 }
 0x1ab   : > { %v1540_v45 = vsub.f32 %v1508_v61, %v2988_v8  ;;  %v1541_v4 = vsub.f32 %v1509_v24, %v2996_v38  ;;  %v1510_v35 = vadd.f32 %v3149_v0, %v1474_v26 }
 0x1ac   : > { %v1543_v61 = vsub.f32 %v1511_v28, %v3013_v42 }
 0x1ad   : > { %v1542_v3 = vsub.f32 %v1510_v35, %v3003_v9 }
 0x1c1   : > { %v1575_v57 = vpop.permute.xlu0 %1574 }
 0x1c2   : > { %v1732_v43 = vmul.f32 %v1575_v57, %v1540_v45  ;;  %v1477_v45 = vmul.f32 %v3142_v29, %v2650_v12  ;;  %v1478_v12 = vmul.f32 %v3142_v29, %v2680_v30  ;;  %v1479_v30 = vmul.f32 %v3142_v29, %v2669_v23 }
 0x1c4   : > { %v1764_v37 = vadd.f32 %v1732_v43, %v2988_v8  ;;  %v1483_v8 = vmul.f32 %v3142_v29, %v2712_v49  ;;  %v1485_v49 = vmul.f32 %v3142_v29, %v2726_v55  ;;  %v1544_v43 = vsub.f32 %v1512_v1, %v3023_v20 }
 0x1c5   : > { %v1580_v6 = vpop.permute.xlu1 %1579  ;;  %v1515_v23 = vadd.f32 %v3149_v0, %v1479_v30 }
 0x1c6   : > { %1796 = vst [vmem:[%s2516_s19] sm:$0xff] %v1764_v37  ;;  %v1733_v51 = vmul.f32 %v1580_v6, %v1541_v4  ;;  %v1519_v26 = vadd.f32 %v3149_v0, %v1483_v8  ;;  %v1513_v4 = vadd.f32 %v3149_v0, %v1477_v45  ;;  %v1521_v55 = vadd.f32 %v3149_v0, %v1485_v49 }
 0x1c7   : > { %v1547_v49 = vsub.f32 %v1515_v23, %v3053_v36 }
 0x1c8   : > { %v1765_v54 = vadd.f32 %v1733_v51, %v2996_v38  ;;  %v1549_v38 = vsub.f32 %v1517_v5, %v3073_v32  ;;  %v1551_v6 = vsub.f32 %v1519_v26, %v3093_v10  ;;  %v1545_v51 = vsub.f32 %v1513_v4, %v3033_v50 }
 0x1c9   : > { %v1585_v31 = vpop.permute.xlu1 %1584  ;;  %v1553_v8 = vsub.f32 %v1521_v55, %v3113_v40 }
 0x1ca   : > { %1797 = vst [vmem:[%s2516_s19 + $0x8] sm:$0xff] %v1765_v54  ;;  %v1734_v33 = vmul.f32 %v1585_v31, %v1542_v3  ;;  %v1514_v3 = vadd.f32 %v3149_v0, %v1478_v12  ;;  %v1491_v12 = vmul.f32 %v3142_v29, %v2786_v34 }
 0x1cc   : > { %v1766_v24 = vadd.f32 %v1734_v33, %v3003_v9  ;;  %v1527_v34 = vadd.f32 %v3149_v0, %v1491_v12 }
 0x1cd   : > { %v1590_v19 = vpop.permute.xlu1 %1589 }
 0x1ce   : > { %1798 = vst [vmem:[%s2516_s19 + $0x10] sm:$0xff] %v1766_v24  ;;  %v1735_v57 = vmul.f32 %v1590_v19, %v1543_v61  ;;  %v1546_v61 = vsub.f32 %v1514_v3, %v3043_v14 }
 0x1d0   : > { %v1767_v9 = vadd.f32 %v1735_v57, %v3013_v42  ;;  %v1620_v35 = vpop.permute.xlu0 %1619  ;;  %v1487_v42 = vmul.f32 %v3142_v29, %v2746_v7 }
 0x1d1   : > { %v1595_v56 = vpop.permute.xlu1 %1594  ;;  %v1741_v37 = vmul.f32 %v1620_v35, %v1549_v38  ;;  %v1489_v38 = vmul.f32 %v3142_v29, %v2766_v18 }
 0x1d2   : > { %1799 = vst [vmem:[%s2516_s19 + $0x18] sm:$0xff] %v1767_v9  ;;  %v1736_v25 = vmul.f32 %v1595_v56, %v1544_v43 }
 0x1d3   : > { %v1773_v28 = vadd.f32 %v1741_v37, %v3073_v32  ;;  %v1480_v32 = vmul.f32 %v3142_v29, %v2699_v41  ;;  %v1525_v18 = vadd.f32 %v3149_v0, %v1489_v38 }
 0x1d4   : > { %v1768_v63 = vadd.f32 %v1736_v25, %v3023_v20  ;;  %v1630_v54 = vpop.permute.xlu0 %1629  ;;  %v1523_v20 = vadd.f32 %v3149_v0, %v1487_v42 }
 0x1d5   : > { %1805 = vst [vmem:[%s2516_s19 + $0x48] sm:$0xff] %v1773_v28  ;;  %v1600_v31 = vpop.permute.xlu1 %1599  ;;  %v1743_v5 = vmul.f32 %v1630_v54, %v1551_v6  ;;  %v1516_v41 = vadd.f32 %v3149_v0, %v1480_v32  ;;  %v1557_v25 = vsub.f32 %v1525_v18, %v3009_v21  ;;  %v3458_v32 = vld [vmem:[#allocation12_spill] sm:$0xff]  ;;  %v3462_v18 = vld [vmem:[#allocation25_spill] sm:$0xff] }
 0x1d6   : > { %1800 = vst [vmem:[%s2516_s19 + $0x20] sm:$0xff] %v1768_v63  ;;  %v1737_v33 = vmul.f32 %v1600_v31, %v1545_v51  ;;  %v1493_v51 = vmul.f32 %v3142_v29, %v2813_v53  ;;  %v1559_v53 = vsub.f32 %v1527_v34, %v3029_v48  ;;  %v3465_v34 = vld [vmem:[#allocation14_spill] sm:$0xff] }
 0x1d7   : > { %v1775_v7 = vadd.f32 %v1743_v5, %v3093_v10  ;;  %v1482_v10 = vmul.f32 %v3142_v29, %v2718_v52  ;;  %v1548_v56 = vsub.f32 %v1516_v41, %v3063_v27  ;;  %v1495_v5 = vmul.f32 %v3142_v29, %v2826_v60 }
 0x1d8   : > { %v1769_v1 = vadd.f32 %v1737_v33, %v3033_v50  ;;  %v1640_v45 = vpop.permute.xlu0 %1639  ;;  %v1555_v50 = vsub.f32 %v1523_v20, %v3131_v22  ;;  %v1529_v31 = vadd.f32 %v3149_v0, %v1493_v51  ;;  %v1492_v51 = vmul.f32 %v3142_v29, %v3465_v34 }
 0x1d9   : > { %1807 = vst [vmem:[%s2516_s19 + $0x58] sm:$0xff] %v1775_v7  ;;  %v1605_v24 = vpop.permute.xlu1 %1604  ;;  %v1745_v19 = vmul.f32 %v1640_v45, %v1553_v8  ;;  %v1518_v52 = vadd.f32 %v3149_v0, %v1482_v10  ;;  %v1488_v7 = vmul.f32 %v3142_v29, %v3458_v32  ;;  %v3468_v32 = vld [vmem:[#allocation22_spill] sm:$0xff]  ;;  %v1502_v34 = vmul.f32 %v3142_v29, %v2914_v13 }
 0x1da   : > { %1801 = vst [vmem:[%s2516_s19 + $0x28] sm:$0xff] %v1769_v1  ;;  %v1738_v26 = vmul.f32 %v1605_v24, %v1546_v61  ;;  %v3459_v1 = vld [vmem:[#allocation23_spill] sm:$0xff]  ;;  %v1531_v24 = vadd.f32 %v3149_v0, %v1495_v5 }
 0x1db   : > { %v1777_v57 = vadd.f32 %v1745_v19, %v3113_v40  ;;  %v1484_v40 = vmul.f32 %v3142_v29, %v2739_v62  ;;  %v1550_v28 = vsub.f32 %v1518_v52, %v3083_v58  ;;  %v1561_v45 = vsub.f32 %v1529_v31, %v3459_v1  ;;  %v3463_v52 = vld [vmem:[#allocation27_spill] sm:$0xff] }
 0x1dc   : > { %v1770_v43 = vadd.f32 %v1738_v26, %v3043_v14  ;;  %v1524_v10 = vadd.f32 %v3149_v0, %v1488_v7  ;;  %v1563_v12 = vsub.f32 %v1531_v24, %v3462_v18  ;;  %v3467_v31 = vld [vmem:[#allocation15_spill] sm:$0xff] }
 0x1dd   : > { %1809 = vst [vmem:[%s2516_s19 + $0x68] sm:$0xff] %v1777_v57  ;;  %v1610_v4 = vpop.permute.xlu1 %1609  ;;  %v1520_v62 = vadd.f32 %v3149_v0, %v1484_v40  ;;  %v3461_v57 = vld [vmem:[#allocation13_spill] sm:$0xff]  ;;  %v1494_v5 = vmul.f32 %v3142_v29, %v3467_v31 }
 0x1de   : > { %1802 = vst [vmem:[%s2516_s19 + $0x30] sm:$0xff] %v1770_v43  ;;  %v1739_v9 = vmul.f32 %v1610_v4, %v1547_v49  ;;  %v1650_v35 = vpop.permute.xlu0 %1649  ;;  %v3460_v49 = vld [vmem:[#allocation17_spill] sm:$0xff] }
 0x1df   : > { %v1747_v14 = vmul.f32 %v1650_v35, %v1555_v50  ;;  %v1499_v41 = vmul.f32 %v3142_v29, %v3460_v49  ;;  %v1490_v50 = vmul.f32 %v3142_v29, %v3461_v57  ;;  %v3470_v49 = vld [vmem:[#allocation24_spill] sm:$0xff] }
 0x1e0   : > { %v1771_v37 = vadd.f32 %v1739_v9, %v3053_v36  ;;  %v1486_v36 = vmul.f32 %v3142_v29, %v2759_v15  ;;  %v1552_v15 = vsub.f32 %v1520_v62, %v3103_v11 }
 0x1e1   : > { %v1779_v6 = vadd.f32 %v1747_v14, %v3131_v22  ;;  %v1615_v55 = vpop.permute.xlu1 %1614  ;;  %v1501_v14 = vmul.f32 %v3142_v29, %v2893_v59 }
 0x1e2   : > { %1803 = vst [vmem:[%s2516_s19 + $0x38] sm:$0xff] %v1771_v37  ;;  %v1740_v3 = vmul.f32 %v1615_v55, %v1548_v56  ;;  %v1660_v30 = vpop.permute.xlu0 %1659  ;;  %v1522_v61 = vadd.f32 %v3149_v0, %v1486_v36 }
 0x1e3   : > { %1811 = vst [vmem:[%s2516_s19 + $0x78] sm:$0xff] %v1779_v6  ;;  %v1749_v22 = vmul.f32 %v1660_v30, %v1557_v25  ;;  %v3464_v6 = vld [vmem:[#allocation20_spill] sm:$0xff]  ;;  %v1526_v25 = vadd.f32 %v3149_v0, %v1490_v50 }
 0x1e4   : > { %v1772_v42 = vadd.f32 %v1740_v3, %v3063_v27  ;;  %v1554_v26 = vsub.f32 %v1522_v61, %v3123_v17  ;;  %v1556_v55 = vsub.f32 %v1524_v10, %v3464_v6  ;;  %v3471_v10 = vld [vmem:[#allocation18_spill] sm:$0xff] }
 0x1e5   : > { %v1781_v63 = vadd.f32 %v1749_v22, %v3009_v21  ;;  %v1625_v54 = vpop.permute.xlu1 %1624  ;;  %v1497_v21 = vmul.f32 %v3142_v29, %v2846_v16  ;;  %v1503_v22 = vmul.f32 %v3142_v29, %v2904_v46  ;;  %v1498_v57 = vmul.f32 %v3142_v29, %v3471_v10 }
 0x1e6   : > { %1804 = vst [vmem:[%s2516_s19 + $0x40] sm:$0xff] %v1772_v42  ;;  %v1742_v8 = vmul.f32 %v1625_v54, %v1550_v28  ;;  %v1670_v33 = vpop.permute.xlu0 %1669 }
 0x1e7   : > { %1813 = vst [vmem:[%s2516_s19 + $0x88] sm:$0xff] %v1781_v63  ;;  %v1751_v27 = vmul.f32 %v1670_v33, %v1559_v53  ;;  %v3466_v63 = vld [vmem:[#allocation21_spill] sm:$0xff]  ;;  %v1528_v53 = vadd.f32 %v3149_v0, %v1492_v51 }
 0x1e8   : > { %v1774_v23 = vadd.f32 %v1742_v8, %v3083_v58  ;;  %v1533_v58 = vadd.f32 %v3149_v0, %v1497_v21  ;;  %v1558_v54 = vsub.f32 %v1526_v25, %v3466_v63  ;;  %v1539_v21 = vadd.f32 %v3149_v0, %v1503_v22 }
 0x1e9   : > { %v1783_v60 = vadd.f32 %v1751_v27, %v3029_v48  ;;  %v1635_v20 = vpop.permute.xlu1 %1634  ;;  %v1560_v7 = vsub.f32 %v1528_v53, %v3468_v32 }
 0x1ea   : > { %1806 = vst [vmem:[%s2516_s19 + $0x50] sm:$0xff] %v1774_v23  ;;  %v1744_v19 = vmul.f32 %v1635_v20, %v1552_v15  ;;  %v1680_v38 = vpop.permute.xlu0 %1679  ;;  %v1565_v40 = vsub.f32 %v1533_v58, %v3463_v52  ;;  %v3469_v20 = vld [vmem:[#allocation16_spill] sm:$0xff] }
 0x1eb   : > { %1815 = vst [vmem:[%s2516_s19 + $0x98] sm:$0xff] %v1783_v60  ;;  %v1753_v16 = vmul.f32 %v1680_v38, %v1561_v45  ;;  %v1530_v60 = vadd.f32 %v3149_v0, %v1494_v5 }
 0x1ec   : > { %v1776_v48 = vadd.f32 %v1744_v19, %v3103_v11  ;;  %v1535_v11 = vadd.f32 %v3149_v0, %v1499_v41 }
 0x1ed   : > { %v1785_v43 = vadd.f32 %v1753_v16, %v3459_v1  ;;  %v1645_v4 = vpop.permute.xlu1 %1644  ;;  %v1496_v1 = vmul.f32 %v3142_v29, %v3469_v20  ;;  %v1571_v16 = vsub.f32 %v1539_v21, %v3144_v44  ;;  %v1562_v41 = vsub.f32 %v1530_v60, %v3470_v49 }
 0x1ee   : > { %1808 = vst [vmem:[%s2516_s19 + $0x60] sm:$0xff] %v1776_v48  ;;  %v1746_v9 = vmul.f32 %v1645_v4, %v1554_v26  ;;  %v1690_v35 = vpop.permute.xlu0 %1689  ;;  %v1567_v59 = vsub.f32 %v1535_v11, %v3109_v2 }
 0x1ef   : > { %1817 = vst [vmem:[%s2516_s19 + $0xa8] sm:$0xff] %v1785_v43  ;;  %v1755_v56 = vmul.f32 %v1690_v35, %v1563_v12  ;;  %v1532_v48 = vadd.f32 %v3149_v0, %v1496_v1 }
 0x1f0   : > { %v1778_v37 = vadd.f32 %v1746_v9, %v3123_v17  ;;  %v1537_v17 = vadd.f32 %v3149_v0, %v1501_v14  ;;  %v3472_v9 = vld [vmem:[#allocation26_spill] sm:$0xff] }
 0x1f1   : > { %v1787_v3 = vadd.f32 %v1755_v56, %v3462_v18  ;;  %v1655_v30 = vpop.permute.xlu1 %1654  ;;  %v1564_v35 = vsub.f32 %v1532_v48, %v3472_v9  ;;  %v1534_v56 = vadd.f32 %v3149_v0, %v1498_v57 }
 0x1f2   : > { %1810 = vst [vmem:[%s2516_s19 + $0x70] sm:$0xff] %v1778_v37  ;;  %v1748_v28 = vmul.f32 %v1655_v30, %v1556_v55  ;;  %v1700_v62 = vpop.permute.xlu0 %1699  ;;  %v1569_v46 = vsub.f32 %v1537_v17, %v3129_v39  ;;  %v3475_v30 = vld [vmem:[#allocation29_spill] sm:$0xff] }
 0x1f3   : > { %1819 = vst [vmem:[%s2516_s19 + $0xb8] sm:$0xff] %v1787_v3  ;;  %v1757_v36 = vmul.f32 %v1700_v62, %v1565_v40  ;;  %v1538_v62 = vadd.f32 %v3149_v0, %v1502_v34 }
 0x1f4   : > { %v1780_v42 = vadd.f32 %v1748_v28, %v3464_v6  ;;  %v3474_v6 = vld [vmem:[#allocation28_spill] sm:$0xff] }
 0x1f5   : > { %v1789_v8 = vadd.f32 %v1757_v36, %v3463_v52  ;;  %v1665_v33 = vpop.permute.xlu1 %1664  ;;  %v3473_v52 = vld [vmem:[#allocation19_spill] sm:$0xff]  ;;  %v1566_v55 = vsub.f32 %v1534_v56, %v3474_v6  ;;  %v1570_v22 = vsub.f32 %v1538_v62, %v3136_v47 }
 0x1f6   : > { %1812 = vst [vmem:[%s2516_s19 + $0x80] sm:$0xff] %v1780_v42  ;;  %v1750_v15 = vmul.f32 %v1665_v33, %v1558_v54  ;;  %v1710_v61 = vpop.permute.xlu0 %1709  ;;  %v1500_v40 = vmul.f32 %v3142_v29, %v3473_v52 }
 0x1f7   : > { %1821 = vst [vmem:[%s2516_s19 + $0xc8] sm:$0xff] %v1789_v8  ;;  %v1759_v27 = vmul.f32 %v1710_v61, %v1567_v59 }
 0x1f8   : > { %v1782_v23 = vadd.f32 %v1750_v15, %v3466_v63  ;;  %v1536_v25 = vadd.f32 %v3149_v0, %v1500_v40 }
 0x1f9   : > { %v1791_v45 = vadd.f32 %v1759_v27, %v3109_v2  ;;  %v1675_v24 = vpop.permute.xlu1 %1674 }
 0x1fa   : > { %1814 = vst [vmem:[%s2516_s19 + $0x90] sm:$0xff] %v1782_v23  ;;  %v1752_v19 = vmul.f32 %v1675_v24, %v1560_v7  ;;  %v1720_v38 = vpop.permute.xlu0 %1719  ;;  %v1568_v28 = vsub.f32 %v1536_v25, %v3475_v30 }
 0x1fb   : > { %1823 = vst [vmem:[%s2516_s19 + $0xd8] sm:$0xff] %v1791_v45  ;;  %v1761_v26 = vmul.f32 %v1720_v38, %v1569_v46 }
 0x1fc   : > { %v1784_v58 = vadd.f32 %v1752_v19, %v3468_v32 }
 0x1fd   : > { %v1793_v2 = vadd.f32 %v1761_v26, %v3129_v39  ;;  %v1685_v50 = vpop.permute.xlu1 %1684 }
 0x1fe   : > { %1816 = vst [vmem:[%s2516_s19 + $0xa0] sm:$0xff] %v1784_v58  ;;  %v1754_v43 = vmul.f32 %v1685_v50, %v1562_v41  ;;  %v1730_v4 = vpop.permute.xlu0 %1729 }
 0x1ff   : > { %1825 = vst [vmem:[%s2516_s19 + $0xe8] sm:$0xff] %v1793_v2  ;;  %v1763_v18 = vmul.f32 %v1730_v4, %v1571_v16 }
 0x200   : > { %v1786_v12 = vadd.f32 %v1754_v43, %v3470_v49 }
 0x201   : > { %v1795_v11 = vadd.f32 %v1763_v18, %v3144_v44  ;;  %v1695_v39 = vpop.permute.xlu1 %1694 }
 0x202   : > { %1818 = vst [vmem:[%s2516_s19 + $0xb0] sm:$0xff] %v1786_v12  ;;  %v1756_v14 = vmul.f32 %v1695_v39, %v1564_v35 }
 0x203   : > { %1827 = vst [vmem:[%s2516_s19 + $0xf8] sm:$0xff] %v1795_v11 }
 0x204   : > { %v1788_v37 = vadd.f32 %v1756_v14, %v3472_v9 }
 0x205   : > { %v1705_v51 = vpop.permute.xlu1 %1704 }
 0x206   : > { %1820 = vst [vmem:[%s2516_s19 + $0xc0] sm:$0xff] %v1788_v37  ;;  %v1758_v3 = vmul.f32 %v1705_v51, %v1566_v55 }
 0x208   : > { %v1790_v44 = vadd.f32 %v1758_v3, %v3474_v6 }
 0x209   : > { %v1715_v36 = vpop.permute.xlu1 %1714 }
 0x20a   : > { %1822 = vst [vmem:[%s2516_s19 + $0xd0] sm:$0xff] %v1790_v44  ;;  %v1760_v59 = vmul.f32 %v1715_v36, %v1568_v28 }
 0x20c   : > { %v1792_v17 = vadd.f32 %v1760_v59, %v3475_v30 }
 0x20d   : > { %v1725_v42 = vpop.permute.xlu1 %1724 }
 0x20e   : > { %1824 = vst [vmem:[%s2516_s19 + $0xe0] sm:$0xff] %v1792_v17  ;;  %v1762_v13 = vmul.f32 %v1725_v42, %v1570_v22 }
 0x210   : > { %v1794_v29 = vadd.f32 %v1762_v13, %v3136_v47 }
 0x212   : > { %1826 = vst [vmem:[%s2516_s19 + $0xf0] sm:$0xff] %v1794_v29 }
 0x213 PF: > { %s2048_s9 = sshll.u32 %s2363_s30, 12  ;;  %s1845_s21 = sshll.u32 %s2516_s19, 4  ;;  %s3348_s21 = int_to_ptr.vmem [resolvable:$true] %s1845_s21 }
 0x214   : > { %s3345_s20 = scalar_lea.hbm %s3411_s7, %s2048_s9  ;;  %s3476_s22 = sand.u32 1, %s2351_s27  }
 0x215   : > { %s3352_s23 = scalar_lea.sflag [#allocation7], %s3476_s22  ;;  %s2281_s24 = scalar_lea.vmem %s3348_s21, 4096 }
 0x216   : > { %p2282_p2 = scmp.ne.s32.totalorder %s3348_s21, %s2281_s24  ;;  %s2380_s30 = smov [#allocation6]  }
 0x217   : > { %s2285_s25 = sshll.u32 %s2380_s30, 4  ;;  %s2286_s25 = int_to_ptr.vmem [resolvable:$false] %s2285_s25 }
 0x218   : > { %p2283_p4 = pnand %p2282_p2, %p2475_p3  ;;  %s2287_s11 = scalar_lea.vmem %s2286_s25, 8192 }
 0x219   : > { %p2288_p6 = scmp.lt.s32.totalorder %s3348_s21, %s2286_s25  ;;  %p2289_p7 = scmp.lt.s32.totalorder %s2287_s11, %s2281_s24 }
 0x21a   : > { %p2284_p5 = pneg %p2283_p4 }
 0x21b   : > { %p2290_p8 = por %p2289_p7, %p2288_p6 }
 0x21d   : > { %p2291_p10 = pnand %p2290_p8, %p2284_p5 }
 0x21f   : > { %2294 = shalt.err (!%p2291_p10)
}
 0x220   : > { %s2295_s19 = scalar_lea.hbm %s3345_s20, 4096  ;;  %s2299_s6 = scalar_lea.hbm %s3411_s7, 8192 }
 0x221   : > { %p2296_p11 = scmp.ne.s32.totalorder %s3345_s20, %s2295_s19  ;;  %p2300_p0 = scmp.lt.u32.totalorder %s3345_s20, %s3411_s7 }
 0x222   : > { %p2301_p1 = scmp.lt.u32.totalorder %s2299_s6, %s2295_s19  ;;  %p2303_p4 = scmp.lt.u32.totalorder %s2295_s19, %s3345_s20 }
 0x223   : > { %p2297_p12 = pnand %p2296_p11, %p2475_p3 }
 0x224   : > { %p2302_p2 = por %p2301_p1, %p2300_p0 }
 0x225   : > { %p2298_p13 = pneg %p2297_p12 }
 0x226   : > { %p2304_p5 = por %p2303_p4, %p2302_p2 }
 0x228   : > { %p2305_p6 = pnand %p2304_p5, %p2298_p13 }
 0x22a   : > { %2308 = shalt.err (!%p2305_p6)
}
 0x22b   : > { %s2381_s13 = smov 128   ;;  %s2382_s29 = smov 8  }
 0x22c   : > { %2073 = dma.vmem_to_hbm [thread:$0]  (%p2475_p3), %s3348_s21, 4096, %s3345_s20, %s3352_s23, %s2381_s13, %s2381_s13, %s2382_s29  }
 0x22d PF: > { %p2079_p7 = scmp.ge.s32.totalorder %s2375_s10, 2  ;;  %s1860_s22 = sand.u32 1, %s2347_s26  }
 0x22e   : > { %s1861_s24 = scalar_lea.sflag [#allocation7], %s1860_s22 }
 0x22f   : > { %p2076_p8 = pnand %p2079_p7, %p2485_p9 }
 0x231   : > { %2342 = dma.done.wait (!%p2076_p8), %s1861_s24, 4096  }
 0x232   : > { %2344 = vsyncadd (!%p2076_p8), %s1861_s24, 4294963200  ;;  %s22_s10 = sadd.s32 1, %s2375_s10   ;;  %s3477_s30 = sld [smem:[#allocation9_spill]] }
 0x233   : > { %p19_p10 = scmp.ge.s32.totalorder %s22_s10, 6   ;;  %s3478_s14 = sld [smem:[#allocation10_spill]] }
 0x234   : > { %s3479_s9 = sld [smem:[#allocation11_spill]]  ;;  %s3480_s26 = smov %s2351_s27 }
 0x235   : > { %s3481_s27 = smov %s2355_s28  ;;  %s3482_s28 = smov %s2493_s18 }
 0x236   : > { %s3483_s29 = smov %s2367_s8  ;;  %21 = sbr.rel (!%p19_p10) target bundleno = 8 (0x8), region = 101 }
 0x239   : > { %s3484_s8 = smov %s3478_s14 }
 0x23d   :  { %1866 = vsyncpa [#allocation7], 1 }
 0x23e   :  { %1868 = vsyncpa [#allocation7 + $0x1], 1 }

</bundles_post_ra>
